<compile_context>
chip_gen: v5e
topology: v5e:2x2
jax: 0.10.0
libtpu: 0.0.40
codegen_flags: <defaults>
</compile_context>

<pallas_src>
from functools import partial

import jax
import jax.numpy as jnp
from jax import lax
from jax.experimental import pallas as pl
from jax.experimental.pallas import tpu as pltpu

C_PAD = 128      # lane-dense channel padding
ROW_TILE = 512   # rows of the flattened (N*H*W) axis per grid step


def _conv_bn_relu_proj_kernel(p_ref, w1_ref, g_ref, b_ref, w2_ref, b2_ref,
                              o_ref, sum_ref, ssq_ref,
                              *, inv_rows, eps, apply_proj):
    """Two-phase fused block.

    grid = (2, num_row_tiles):
      phase 0: conv tile (one im2col GEMM) -> accumulate per-channel sum / sumsq
      phase 1: recompute conv tile -> BatchNorm (batch stats, folded scale/shift)
               -> ReLU [-> fused 1x1 conv projection + bias] -> lane-dense store
    """
    phase = pl.program_id(0)
    tile = pl.program_id(1)

    @pl.when((phase == 0) & (tile == 0))
    def _init_stats():
        sum_ref[...] = jnp.zeros_like(sum_ref)
        ssq_ref[...] = jnp.zeros_like(ssq_ref)

    # Single GEMM: (ROW_TILE, K*K*Cin) @ (K*K*Cin, 128).
    conv = jnp.dot(p_ref[...], w1_ref[...], preferred_element_type=jnp.float32)

    @pl.when(phase == 0)
    def _accumulate():
        sum_ref[...] += jnp.sum(conv, axis=0, keepdims=True)
        ssq_ref[...] += jnp.sum(conv * conv, axis=0, keepdims=True)
        o_ref[...] = conv          # deterministic writeback; overwritten in phase 1

    @pl.when(phase == 1)
    def _normalize_and_emit():
        mean = sum_ref[...] * inv_rows
        var = jnp.maximum(ssq_ref[...] * inv_rows - mean * mean, 0.0)
        scale = g_ref[...] * lax.rsqrt(var + eps)        # (1, 128)
        shift = b_ref[...] - mean * scale                # (1, 128)
        y = jnp.maximum(conv * scale + shift, 0.0)       # BN + ReLU in one pass
        if apply_proj:                                   # fused 1x1 Conv2d + bias
            y = jnp.dot(y, w2_ref[...],
                        preferred_element_type=jnp.float32) + b2_ref[...]
        o_ref[...] = y


def _pad_last(a, target):
    pad = target - a.shape[-1]
    if pad <= 0:
        return a
    return jnp.pad(a, [(0, 0)] * (a.ndim - 1) + [(0, pad)])


def conv_bn_relu_block(x_nhwc, w_oihw, gamma, beta, proj_w=None, proj_b=None,
                       *, eps=1e-5):
    """Conv2d(KxK, stride=1, same pad, bias dropped) -> BatchNorm2d(train) -> ReLU
    [-> 1x1 Conv2d projection].  NHWC in, (N,H,W,C_PAD) out + number of real channels."""
    N, H, W, Cin = x_nhwc.shape
    Cmid, _, K, _ = w_oihw.shape
    pad = (K - 1) // 2

    # im2col: one patch matrix, contraction = K*K*Cin (column order (kh, kw, ci)).
    xp = jnp.pad(x_nhwc, ((0, 0), (pad, pad), (pad, pad), (0, 0)))
    cols = [xp[:, kh:kh + H, kw:kw + W, :] for kh in range(K) for kw in range(K)]
    patches = jnp.concatenate(cols, axis=-1).reshape(N * H * W, K * K * Cin)

    rows = N * H * W
    rows_pad = ((rows + ROW_TILE - 1) // ROW_TILE) * ROW_TILE
    if rows_pad != rows:
        # zero rows: with the conv bias dropped they contribute 0 to the BN stats.
        patches = jnp.pad(patches, ((0, rows_pad - rows), (0, 0)))

    # Channel-pad weights / affine params to a lane-dense 128.
    w1 = jnp.transpose(w_oihw, (2, 3, 1, 0)).reshape(K * K * Cin, Cmid)
    w1 = _pad_last(w1.astype(jnp.float32), C_PAD)
    g = _pad_last(gamma.reshape(1, Cmid).astype(jnp.float32), C_PAD)
    b = _pad_last(beta.reshape(1, Cmid).astype(jnp.float32), C_PAD)

    apply_proj = proj_w is not None
    if apply_proj:
        Cout = proj_w.shape[0]
        w2 = proj_w.reshape(Cout, Cmid).T.astype(jnp.float32)      # (Cmid, Cout)
        w2 = jnp.pad(w2, ((0, C_PAD - Cmid), (0, C_PAD - Cout)))
        b2 = _pad_last(proj_b.reshape(1, Cout).astype(jnp.float32), C_PAD)
        c_real = Cout
    else:
        w2 = jnp.zeros((C_PAD, C_PAD), jnp.float32)                # unused
        b2 = jnp.zeros((1, C_PAD), jnp.float32)                    # unused
        c_real = Cmid

    kcols = K * K * Cin
    grid = (2, rows_pad // ROW_TILE)

    out = pl.pallas_call(
        partial(_conv_bn_relu_proj_kernel,
                inv_rows=1.0 / rows, eps=eps, apply_proj=apply_proj),
        out_shape=jax.ShapeDtypeStruct((rows_pad, C_PAD), jnp.float32),
        grid_spec=pltpu.PrefetchScalarGridSpec(
            num_scalar_prefetch=0,
            grid=grid,
            in_specs=[
                pl.BlockSpec((ROW_TILE, kcols), lambda p, t: (t, 0)),   # patches
                pl.BlockSpec((kcols, C_PAD), lambda p, t: (0, 0)),      # conv weight
                pl.BlockSpec((1, C_PAD), lambda p, t: (0, 0)),          # gamma
                pl.BlockSpec((1, C_PAD), lambda p, t: (0, 0)),          # beta
                pl.BlockSpec((C_PAD, C_PAD), lambda p, t: (0, 0)),      # 1x1 proj weight
                pl.BlockSpec((1, C_PAD), lambda p, t: (0, 0)),          # 1x1 proj bias
            ],
            out_specs=pl.BlockSpec((ROW_TILE, C_PAD), lambda p, t: (t, 0)),
            scratch_shapes=[pltpu.VMEM((1, C_PAD), jnp.float32),        # channel sum
                            pltpu.VMEM((1, C_PAD), jnp.float32)],       # channel sumsq
        ),
        compiler_params=pltpu.CompilerParams(
            dimension_semantics=("arbitrary", "arbitrary"),
            vmem_limit_bytes=32 * 1024 * 1024,
        ),
    )(patches, w1, g, b, w2, b2)

    return out[:rows].reshape(N, H, W, C_PAD), c_real


def out_conv_refine(x_nchw, params, *, kernel_size, use_double_conv, eps=1e-5):
    """Pallas implementation of OutConvRefine.forward. x_nchw: (N, in_ch, H, W)."""
    del kernel_size  # taken from the weight shapes
    x = jnp.transpose(x_nchw, (0, 2, 3, 1)).astype(jnp.float32)    # NCHW -> NHWC boundary
    if use_double_conv:
        y, c = conv_bn_relu_block(x, params["w1a"], params["g1a"], params["b1a"], eps=eps)
        y = y[..., :c]                                             # drop zero-padded lanes
        y, c = conv_bn_relu_block(y, params["w1b"], params["g1b"], params["b1b"],
                                  proj_w=params["w2"], proj_b=params["b2"], eps=eps)
    else:
        y, c = conv_bn_relu_block(x, params["w1"], params["g1"], params["b1"],
                                  proj_w=params["w2"], proj_b=params["b2"], eps=eps)
    return jnp.transpose(y[..., :c], (0, 3, 1, 2))                 # NHWC -> NCHW boundary


# ----------------------------- pure-JAX reference -----------------------------
def _reference(x, params, *, kernel_size, use_double_conv, eps=1e-5):
    pad = (kernel_size - 1) // 2

    def conv(x, w, b, p):
        y = lax.conv_general_dilated(x, w, (1, 1), ((p, p), (p, p)),
                                     dimension_numbers=("NCHW", "OIHW", "NCHW"))
        return y + b[None, :, None, None]

    def bn_relu(y, g, b):
        m = jnp.mean(y, axis=(0, 2, 3), keepdims=True)
        v = jnp.mean((y - m) ** 2, axis=(0, 2, 3), keepdims=True)
        y = (y - m) / jnp.sqrt(v + eps) * g[None, :, None, None] + b[None, :, None, None]
        return jnp.maximum(y, 0.0)

    if use_double_conv:
        y = bn_relu(conv(x, params["w1a"], params["bias1a"], pad), params["g1a"], params["b1a"])
        y = bn_relu(conv(y, params["w1b"], params["bias1b"], pad), params["g1b"], params["b1b"])
    else:
        y = bn_relu(conv(x, params["w1"], params["bias1"], pad), params["g1"], params["b1"])
    return conv(y, params["w2"], params["b2"], 0)


if __name__ == "__main__":
    in_ch, mid_ch, out_ch, K = 4, 16, 6, 3   # OutConvRefine hard-codes mid=16
    N, H, W = 2, 16, 16
    eps = 1e-5

    keys = jax.random.split(jax.random.PRNGKey(0), 16)

    def nrm(k, shape, s=1.0):
        return s * jax.random.normal(k, shape, jnp.float32)

    x = jax.random.normal(keys[0], (N, in_ch, H, W), jnp.float32)
    params = dict(
        # SingelConv path
        w1=nrm(keys[1], (mid_ch, in_ch, K, K), 0.1),
        bias1=nrm(keys[2], (mid_ch,), 0.1),          # cancels in BN -> not used by kernel
        g1=1.0 + nrm(keys[3], (mid_ch,), 0.1),
        b1=nrm(keys[4], (mid_ch,), 0.1),
        # DoubleConv path
        w1a=nrm(keys[5], (mid_ch, in_ch, K, K), 0.1),
        bias1a=nrm(keys[6], (mid_ch,), 0.1),
        g1a=1.0 + nrm(keys[7], (mid_ch,), 0.1),
        b1a=nrm(keys[8], (mid_ch,), 0.1),
        w1b=nrm(keys[9], (mid_ch, mid_ch, K, K), 0.1),
        bias1b=nrm(keys[10], (mid_ch,), 0.1),
        g1b=1.0 + nrm(keys[11], (mid_ch,), 0.1),
        b1b=nrm(keys[12], (mid_ch,), 0.1),
        # final 1x1 conv
        w2=nrm(keys[13], (out_ch, mid_ch, 1, 1), 0.1),
        b2=nrm(keys[14], (out_ch,), 0.1),
    )

    for use_double in (False, True):
        out = out_conv_refine(x, params, kernel_size=K, use_double_conv=use_double, eps=eps)
        out = jax.block_until_ready(out)
        ref = _reference(x, params, kernel_size=K, use_double_conv=use_double, eps=eps)
        assert out.shape == ref.shape == (N, out_ch, H, W)
        err = float(jnp.max(jnp.abs(out - ref)))
        assert err < 5e-4, f"use_double_conv={use_double}: max abs err = {err}"

    print("KERNEL_OK")
</pallas_src>

<mosaic_0001>
module attributes {stable_mosaic.version = 11 : i64} {
  func.func @_conv_bn_relu_proj_kernel(%arg0: i32, %arg1: i32, %arg2: memref<512x36xf32, #tpu.memory_space<vmem>>, %arg3: memref<36x128xf32, #tpu.memory_space<vmem>>, %arg4: memref<1x128xf32, #tpu.memory_space<vmem>>, %arg5: memref<1x128xf32, #tpu.memory_space<vmem>>, %arg6: memref<128x128xf32, #tpu.memory_space<vmem>>, %arg7: memref<1x128xf32, #tpu.memory_space<vmem>>, %arg8: memref<512x128xf32, #tpu.memory_space<vmem>>, %arg9: memref<1x128xf32, #tpu.memory_space<vmem>>, %arg10: memref<1x128xf32, #tpu.memory_space<vmem>>) attributes {dimension_semantics = [#tpu.dimension_semantics<arbitrary>, #tpu.dimension_semantics<arbitrary>], iteration_bounds = array<i64: 2, 1>, scalar_prefetch = 0 : i64, scratch_operands = 2 : i64, tpu.core_type = #tpu.core_type<tc>, window_params = [{transform_indices = @transform_0, window_bounds = array<i64: 512, 36>}, {pipeline_mode = #tpu.pipeline_mode<synchronous>, transform_indices = @transform_1, window_bounds = array<i64: 36, 128>}, {pipeline_mode = #tpu.pipeline_mode<synchronous>, transform_indices = @transform_2, window_bounds = array<i64: 1, 128>}, {pipeline_mode = #tpu.pipeline_mode<synchronous>, transform_indices = @transform_3, window_bounds = array<i64: 1, 128>}, {pipeline_mode = #tpu.pipeline_mode<synchronous>, transform_indices = @transform_4, window_bounds = array<i64: 128, 128>}, {pipeline_mode = #tpu.pipeline_mode<synchronous>, transform_indices = @transform_5, window_bounds = array<i64: 1, 128>}, {transform_indices = @transform_6, window_bounds = array<i64: 512, 128>}]} {
    %c0_i32 = arith.constant 0 : i32
    %0 = arith.cmpi eq, %arg0, %c0_i32 : i32
    %c0_i32_0 = arith.constant 0 : i32
    %1 = arith.cmpi eq, %arg1, %c0_i32_0 : i32
    %2 = arith.andi %0, %1 : i1
    %3 = arith.extui %2 : i1 to i32
    %c0_i32_1 = arith.constant 0 : i32
    %4 = arith.cmpi ne, %3, %c0_i32_1 : i32
    scf.if %4 {
      %cst_8 = arith.constant 0.000000e+00 : f32
      %14 = vector.broadcast %cst_8 : f32 to vector<1x128xf32>
      %c0_9 = arith.constant 0 : index
      %c0_10 = arith.constant 0 : index
      %15 = vector.load %arg9[%c0_9, %c0_10] : memref<1x128xf32, #tpu.memory_space<vmem>>, vector<1x128xf32>
      tpu.vector_store %arg9[%c0_9, %c0_10], %14 {strides = array<i32>} : memref<1x128xf32, #tpu.memory_space<vmem>>, vector<1x128xf32>,
      %cst_11 = arith.constant 0.000000e+00 : f32
      %16 = vector.broadcast %cst_11 : f32 to vector<1x128xf32>
      %c0_12 = arith.constant 0 : index
      %c0_13 = arith.constant 0 : index
      %17 = vector.load %arg10[%c0_12, %c0_13] : memref<1x128xf32, #tpu.memory_space<vmem>>, vector<1x128xf32>
      tpu.vector_store %arg10[%c0_12, %c0_13], %16 {strides = array<i32>} : memref<1x128xf32, #tpu.memory_space<vmem>>, vector<1x128xf32>,
    } else {
    }
    %c0 = arith.constant 0 : index
    %c0_2 = arith.constant 0 : index
    %5 = vector.load %arg2[%c0, %c0_2] : memref<512x36xf32, #tpu.memory_space<vmem>>, vector<512x36xf32>
    %c0_3 = arith.constant 0 : index
    %c0_4 = arith.constant 0 : index
    %6 = vector.load %arg3[%c0_3, %c0_4] : memref<36x128xf32, #tpu.memory_space<vmem>>, vector<36x128xf32>
    %cst = arith.constant dense<0.000000e+00> : vector<512x128xf32>
    %7 = tpu.matmul %5, %6, %cst {dimension_numbers = #tpu.dot_dimension_numbers<[1], [0], [0], [1], [0, 0, 1, 1], [], []>} : vector<512x36xf32>, vector<36x128xf32>, vector<512x128xf32> -> vector<512x128xf32>
    %c0_i32_5 = arith.constant 0 : i32
    %8 = arith.cmpi eq, %arg0, %c0_i32_5 : i32
    %9 = arith.extui %8 : i1 to i32
    %c0_i32_6 = arith.constant 0 : i32
    %10 = arith.cmpi ne, %9, %c0_i32_6 : i32
    scf.if %10 {
      %c0_8 = arith.constant 0 : index
      %c0_9 = arith.constant 0 : index
      %14 = vector.load %arg9[%c0_8, %c0_9] : memref<1x128xf32, #tpu.memory_space<vmem>>, vector<1x128xf32>
      %cst_10 = arith.constant dense<0.000000e+00> : vector<128xf32>
      %15 = vector.multi_reduction <add>, %7, %cst_10 [0] : vector<512x128xf32> to vector<128xf32>
      %16 = vector.shape_cast %15 : vector<128xf32> to vector<1x128xf32>
      %17 = arith.addf %14, %16 : vector<1x128xf32>
      %c0_11 = arith.constant 0 : index
      %c0_12 = arith.constant 0 : index
      %18 = vector.load %arg9[%c0_11, %c0_12] : memref<1x128xf32, #tpu.memory_space<vmem>>, vector<1x128xf32>
      tpu.vector_store %arg9[%c0_11, %c0_12], %17 {strides = array<i32>} : memref<1x128xf32, #tpu.memory_space<vmem>>, vector<1x128xf32>,
      %c0_13 = arith.constant 0 : index
      %c0_14 = arith.constant 0 : index
      %19 = vector.load %arg10[%c0_13, %c0_14] : memref<1x128xf32, #tpu.memory_space<vmem>>, vector<1x128xf32>
      %20 = arith.mulf %7, %7 : vector<512x128xf32>
      %cst_15 = arith.constant dense<0.000000e+00> : vector<128xf32>
      %21 = vector.multi_reduction <add>, %20, %cst_15 [0] : vector<512x128xf32> to vector<128xf32>
      %22 = vector.shape_cast %21 : vector<128xf32> to vector<1x128xf32>
      %23 = arith.addf %19, %22 : vector<1x128xf32>
      %c0_16 = arith.constant 0 : index
      %c0_17 = arith.constant 0 : index
      %24 = vector.load %arg10[%c0_16, %c0_17] : memref<1x128xf32, #tpu.memory_space<vmem>>, vector<1x128xf32>
      tpu.vector_store %arg10[%c0_16, %c0_17], %23 {strides = array<i32>} : memref<1x128xf32, #tpu.memory_space<vmem>>, vector<1x128xf32>,
      %c0_18 = arith.constant 0 : index
      %c0_19 = arith.constant 0 : index
      %25 = vector.load %arg8[%c0_18, %c0_19] : memref<512x128xf32, #tpu.memory_space<vmem>>, vector<512x128xf32>
      tpu.vector_store %arg8[%c0_18, %c0_19], %7 {strides = array<i32>} : memref<512x128xf32, #tpu.memory_space<vmem>>, vector<512x128xf32>,
    } else {
    }
    %c1_i32 = arith.constant 1 : i32
    %11 = arith.cmpi eq, %arg0, %c1_i32 : i32
    %12 = arith.extui %11 : i1 to i32
    %c0_i32_7 = arith.constant 0 : i32
    %13 = arith.cmpi ne, %12, %c0_i32_7 : i32
    scf.if %13 {
      %c0_8 = arith.constant 0 : index
      %c0_9 = arith.constant 0 : index
      %14 = vector.load %arg9[%c0_8, %c0_9] : memref<1x128xf32, #tpu.memory_space<vmem>>, vector<1x128xf32>
      %cst_10 = arith.constant 0.001953125 : f32
      %15 = vector.broadcast %cst_10 : f32 to vector<1x128xf32>
      %16 = arith.mulf %14, %15 : vector<1x128xf32>
      %c0_11 = arith.constant 0 : index
      %c0_12 = arith.constant 0 : index
      %17 = vector.load %arg10[%c0_11, %c0_12] : memref<1x128xf32, #tpu.memory_space<vmem>>, vector<1x128xf32>
      %cst_13 = arith.constant 0.001953125 : f32
      %18 = vector.broadcast %cst_13 : f32 to vector<1x128xf32>
      %19 = arith.mulf %17, %18 : vector<1x128xf32>
      %20 = arith.mulf %16, %16 : vector<1x128xf32>
      %21 = arith.subf %19, %20 : vector<1x128xf32>
      %cst_14 = arith.constant 0.000000e+00 : f32
      %22 = vector.broadcast %cst_14 : f32 to vector<1x128xf32>
      %23 = arith.maximumf %21, %22 : vector<1x128xf32>
      %c0_15 = arith.constant 0 : index
      %c0_16 = arith.constant 0 : index
      %24 = vector.load %arg4[%c0_15, %c0_16] : memref<1x128xf32, #tpu.memory_space<vmem>>, vector<1x128xf32>
      %cst_17 = arith.constant 9.99999974E-6 : f32
      %25 = vector.broadcast %cst_17 : f32 to vector<1x128xf32>
      %26 = arith.addf %23, %25 : vector<1x128xf32>
      %27 = math.rsqrt %26 : vector<1x128xf32>
      %28 = arith.mulf %24, %27 : vector<1x128xf32>
      %c0_18 = arith.constant 0 : index
      %c0_19 = arith.constant 0 : index
      %29 = vector.load %arg5[%c0_18, %c0_19] : memref<1x128xf32, #tpu.memory_space<vmem>>, vector<1x128xf32>
      %30 = arith.mulf %16, %28 : vector<1x128xf32>
      %31 = arith.subf %29, %30 : vector<1x128xf32>
      %32 = vector.broadcast %28 : vector<1x128xf32> to vector<512x128xf32>
      %33 = arith.mulf %7, %32 : vector<512x128xf32>
      %34 = vector.broadcast %31 : vector<1x128xf32> to vector<512x128xf32>
      %35 = arith.addf %33, %34 : vector<512x128xf32>
      %cst_20 = arith.constant 0.000000e+00 : f32
      %36 = vector.broadcast %cst_20 : f32 to vector<512x128xf32>
      %37 = arith.maximumf %35, %36 : vector<512x128xf32>
      %c0_21 = arith.constant 0 : index
      %c0_22 = arith.constant 0 : index
      %38 = vector.load %arg6[%c0_21, %c0_22] : memref<128x128xf32, #tpu.memory_space<vmem>>, vector<128x128xf32>
      %cst_23 = arith.constant dense<0.000000e+00> : vector<512x128xf32>
      %39 = tpu.matmul %37, %38, %cst_23 {dimension_numbers = #tpu.dot_dimension_numbers<[1], [0], [0], [1], [0, 0, 1, 1], [], []>} : vector<512x128xf32>, vector<128x128xf32>, vector<512x128xf32> -> vector<512x128xf32>
      %c0_24 = arith.constant 0 : index
      %c0_25 = arith.constant 0 : index
      %40 = vector.load %arg7[%c0_24, %c0_25] : memref<1x128xf32, #tpu.memory_space<vmem>>, vector<1x128xf32>
      %41 = vector.broadcast %40 : vector<1x128xf32> to vector<512x128xf32>
      %42 = arith.addf %39, %41 : vector<512x128xf32>
      %c0_26 = arith.constant 0 : index
      %c0_27 = arith.constant 0 : index
      %43 = vector.load %arg8[%c0_26, %c0_27] : memref<512x128xf32, #tpu.memory_space<vmem>>, vector<512x128xf32>
      tpu.vector_store %arg8[%c0_26, %c0_27], %42 {strides = array<i32>} : memref<512x128xf32, #tpu.memory_space<vmem>>, vector<512x128xf32>,
    } else {
    }
    return
  }
  func.func @transform_0(%arg0: i32, %arg1: i32) -> (i32, i32) {
    %c0_i32 = arith.constant 0 : i32
    %c0_i32_0 = arith.constant 0 : i32
    return %arg1, %c0_i32 : i32, i32
  }
  func.func @transform_1(%arg0: i32, %arg1: i32) -> (i32, i32) {
    %c0_i32 = arith.constant 0 : i32
    %c0_i32_0 = arith.constant 0 : i32
    %c0_i32_1 = arith.constant 0 : i32
    return %c0_i32, %c0_i32_0 : i32, i32
  }
  func.func @transform_2(%arg0: i32, %arg1: i32) -> (i32, i32) {
    %c0_i32 = arith.constant 0 : i32
    %c0_i32_0 = arith.constant 0 : i32
    %c0_i32_1 = arith.constant 0 : i32
    return %c0_i32, %c0_i32_0 : i32, i32
  }
  func.func @transform_3(%arg0: i32, %arg1: i32) -> (i32, i32) {
    %c0_i32 = arith.constant 0 : i32
    %c0_i32_0 = arith.constant 0 : i32
    %c0_i32_1 = arith.constant 0 : i32
    return %c0_i32, %c0_i32_0 : i32, i32
  }
  func.func @transform_4(%arg0: i32, %arg1: i32) -> (i32, i32) {
    %c0_i32 = arith.constant 0 : i32
    %c0_i32_0 = arith.constant 0 : i32
    %c0_i32_1 = arith.constant 0 : i32
    return %c0_i32, %c0_i32_0 : i32, i32
  }
  func.func @transform_5(%arg0: i32, %arg1: i32) -> (i32, i32) {
    %c0_i32 = arith.constant 0 : i32
    %c0_i32_0 = arith.constant 0 : i32
    %c0_i32_1 = arith.constant 0 : i32
    return %c0_i32, %c0_i32_0 : i32, i32
  }
  func.func @transform_6(%arg0: i32, %arg1: i32) -> (i32, i32) {
    %c0_i32 = arith.constant 0 : i32
    %c0_i32_0 = arith.constant 0 : i32
    return %arg1, %c0_i32 : i32, i32
  }
}

</mosaic_0001>

<bundles_post_ra>
// kernel: tpu_custom_call.1
= control target key start
LH: loop header
LB: loop body
LE: loop exit
PB: predicated region body
PF: predicated region fallthrough
CT: control target
= control target key end

     0   :  { %11 = vsyncpa [#allocation5], 0  ;;  %s1873_s21 = smov 0   ;;  %s1875_s22 = smov 0   ;;  %s2890_s0 = inlined_call_operand.vmem [shape: f32[512,36], index: 0, kind: input, shape index: {}]   ;;  %s2891_s1 = inlined_call_operand.vmem [shape: f32[36,128], index: 1, kind: input, shape index: {}]   ;;  %s2892_s2 = inlined_call_operand.vmem [shape: f32[1,128], index: 2, kind: input, shape index: {}]   ;;  %s2893_s3 = inlined_call_operand.vmem [shape: f32[1,128], index: 3, kind: input, shape index: {}]   ;;  %s2894_s4 = inlined_call_operand.vmem [shape: f32[128,128], index: 4, kind: input, shape index: {}]   ;;  %s2895_s5 = inlined_call_operand.vmem [shape: f32[1,128], index: 5, kind: input, shape index: {}]   ;;  %s2896_s6 = inlined_call_operand.hbm [shape: f32[512,128], index: 6, kind: output, shape index: {}]  }
   0x1   :  { %s1877_s23 = smov 0  }
   0x2 LB: > { %s1601_s24 = sadd.s32 4294967295, %s1832_s23   ;;  %s29_s25 = sadd.s32 1, %s1828_s22  ;;  %s1832_s23 = sphi %s1877_s23, %s17_s23   ;;  %s1828_s22 = sphi %s1875_s22, %s2977_s22   ;;  %s1824_s21 = sphi %s1873_s21, %s2976_s21  }
   0x3   : > { %p31_p0 = scmp.ge.s32.totalorder %s29_s25, 2  ;;  %p1604_p1 = scmp.ge.s32.totalorder %s1832_s23, 1 }
   0x4   : > { %p226_p2 = scmp.lt.s32.totalorder %s1832_s23, 3 }
   0x5   : > { %s2979_s25 = smov (%p31_p0, %s29_s25), 0 }
   0x6   : > { %p227_p3 = pnand %p1604_p1, %p226_p2 }
   0x8   : > { %230 = sbr.rel (%p227_p3) target bundleno = 739 (0x2e3), region = 44 }
   0xd   : > { %p258_p4 = scmp.eq.s32.totalorder %s1824_s21, 0 }
   0xe   : > { %v1834_v0 = vmov (%p258_p4), 0.0  }
   0xf   : > { %263 = sbr.rel (!%p258_p4) target bundleno = 20 (0x14), region = 48  ;;  %264 = vst [vmem:[#allocation2] sm:$0x1] (%p258_p4), %v1834_v0 }
  0x10   : > { %265 = vst [vmem:[#allocation3] sm:$0x1] (%p258_p4), %v1834_v0 }
  0x14 PF: > { %v334_v1 = vld [vmem:[%s2891_s1 + $0x20] sm:$0xf]  ;;  %vm528_vm0 = vcmask 1043456   ;;  %v333_v2 = vld [vmem:[%s2891_s1 + $0x18] sm:$0xff]  ;;  %v332_v3 = vld [vmem:[%s2891_s1 + $0x10] sm:$0xff]  ;;  %vm335_vm1 = vcmask 293888  }
  0x15   : > { %1679 = vmatpush.msk.msra.mxu2 %vm528_vm0, %v334_v1  ;;  %1680 = vmatpush.msk.msra.mxu3 %vm528_vm0, %v334_v1  ;;  %v331_v4 = vld [vmem:[%s2891_s1 + $0x8] sm:$0xff]  ;;  %v330_v5 = vld [vmem:[%s2891_s1] sm:$0xff]  ;;  %v300_v14 = vld [vmem:[%s2890_s0 + $0x110] sm:$0xff]  ;;  %p1671_p5 = scmp.ne.s32.totalorder %s1824_s21, 0 }
  0x16   : > { %1606 = vmatpush.msk.msra.mxu0 %vm528_vm0, %v334_v1  ;;  %1678 = vmatpush.msk.msra.mxu1 %vm528_vm0, %v334_v1  ;;  %v298_v6 = vld [vmem:[%s2890_s0 + $0x100] sm:$0xff]  ;;  %v299_v10 = vld [vmem:[%s2890_s0 + $0x108] sm:$0xff]  ;;  %v316_v15 = vld [vmem:[%s2890_s0 + $0x190] sm:$0xff] }
  0x17   : > { %1682 = vmatpush.msra.mxu2 %v333_v2  ;;  %1683 = vmatpush.msra.mxu3 %v333_v2  ;;  %v314_v7 = vld [vmem:[%s2890_s0 + $0x180] sm:$0xff]  ;;  %v315_v11 = vld [vmem:[%s2890_s0 + $0x188] sm:$0xff]  ;;  %v268_v16 = vld [vmem:[%s2890_s0 + $0x10] sm:$0xff] }
  0x18   : > { %544 = vmatpush.msra.mxu0 %v333_v2  ;;  %1681 = vmatpush.msra.mxu1 %v333_v2  ;;  %v266_v8 = vld [vmem:[%s2890_s0] sm:$0xff]  ;;  %v267_v12 = vld [vmem:[%s2890_s0 + $0x8] sm:$0xff]  ;;  %v284_v17 = vld [vmem:[%s2890_s0 + $0x90] sm:$0xff] }
  0x19   : > { %1685 = vmatpush.msra.mxu2 %v332_v3  ;;  %1686 = vmatpush.msra.mxu3 %v332_v3  ;;  %v282_v9 = vld [vmem:[%s2890_s0 + $0x80] sm:$0xff]  ;;  %v283_v13 = vld [vmem:[%s2890_s0 + $0x88] sm:$0xff]  ;;  %v301_v18 = vld [vmem:[%s2890_s0 + $0x118] sm:$0xff] }
  0x1a   : > { %545 = vmatpush.msra.mxu0 %v332_v3  ;;  %1684 = vmatpush.msra.mxu1 %v332_v3  ;;  %v317_v19 = vld [vmem:[%s2890_s0 + $0x198] sm:$0xff]  ;;  %v302_v22 = vld [vmem:[%s2890_s0 + $0x120] sm:$0xff]  ;;  %v303_v26 = vld [vmem:[%s2890_s0 + $0x128] sm:$0xff] }
  0x1b   : > { %1688 = vmatpush.msra.mxu2 %v331_v4  ;;  %1689 = vmatpush.msra.mxu3 %v331_v4  ;;  %v269_v20 = vld [vmem:[%s2890_s0 + $0x18] sm:$0xff]  ;;  %v318_v23 = vld [vmem:[%s2890_s0 + $0x1a0] sm:$0xff]  ;;  %v319_v27 = vld [vmem:[%s2890_s0 + $0x1a8] sm:$0xff] }
  0x1c   : > { %546 = vmatpush.msra.mxu0 %v331_v4  ;;  %1687 = vmatpush.msra.mxu1 %v331_v4  ;;  %v285_v21 = vld [vmem:[%s2890_s0 + $0x98] sm:$0xff]  ;;  %v270_v24 = vld [vmem:[%s2890_s0 + $0x20] sm:$0xff]  ;;  %v271_v28 = vld [vmem:[%s2890_s0 + $0x28] sm:$0xff] }
  0x1d   : > { %1691 = vmatpush.msra.mxu2 %v330_v5  ;;  %1692 = vmatpush.msra.mxu3 %v330_v5  ;;  %v286_v25 = vld [vmem:[%s2890_s0 + $0xa0] sm:$0xff]  ;;  %v287_v29 = vld [vmem:[%s2890_s0 + $0xa8] sm:$0xff]  ;;  %v304_v30 = vld [vmem:[%s2890_s0 + $0x130] sm:$0xff] }
  0x1e   : > { %1639 = vmatmul.msk.f32.vlgmr.msra.gmra.mxu2 %vm335_vm1, %v298_v6  ;;  %1655 = vmatmul.msk.f32.vlgmr.msra.gmra.mxu3 %vm335_vm1, %v314_v7  ;;  %v320_v31 = vld [vmem:[%s2890_s0 + $0x1b0] sm:$0xff]  ;;  %v305_v34 = vld [vmem:[%s2890_s0 + $0x138] sm:$0xff]  ;;  %v306_v38 = vld [vmem:[%s2890_s0 + $0x140] sm:$0xff] }
  0x1f   : > { %547 = vmatpush.msra.mxu0 %v330_v5  ;;  %1690 = vmatpush.msra.mxu1 %v330_v5  ;;  %v272_v32 = vld [vmem:[%s2890_s0 + $0x30] sm:$0xff]  ;;  %v321_v35 = vld [vmem:[%s2890_s0 + $0x1b8] sm:$0xff]  ;;  %v322_v39 = vld [vmem:[%s2890_s0 + $0x1c0] sm:$0xff] }
  0x20   : > { %1607 = vmatmul.msk.f32.vlgmr.msra.gmra.mxu0 %vm335_vm1, %v266_v8  ;;  %1623 = vmatmul.msk.f32.vlgmr.msra.gmra.mxu1 %vm335_vm1, %v282_v9  ;;  %v288_v33 = vld [vmem:[%s2890_s0 + $0xb0] sm:$0xff]  ;;  %v273_v36 = vld [vmem:[%s2890_s0 + $0x38] sm:$0xff]  ;;  %v274_v40 = vld [vmem:[%s2890_s0 + $0x40] sm:$0xff] }
  0x21   : > { %v289_v37 = vld [vmem:[%s2890_s0 + $0xb8] sm:$0xff]  ;;  %v290_v41 = vld [vmem:[%s2890_s0 + $0xc0] sm:$0xff]  ;;  %v307_v42 = vld [vmem:[%s2890_s0 + $0x148] sm:$0xff] }
  0x22   : > { %v323_v43 = vld [vmem:[%s2890_s0 + $0x1c8] sm:$0xff]  ;;  %v308_v46 = vld [vmem:[%s2890_s0 + $0x150] sm:$0xff]  ;;  %v309_v50 = vld [vmem:[%s2890_s0 + $0x158] sm:$0xff] }
  0x23   : > { %v275_v44 = vld [vmem:[%s2890_s0 + $0x48] sm:$0xff]  ;;  %v324_v47 = vld [vmem:[%s2890_s0 + $0x1d0] sm:$0xff]  ;;  %v325_v51 = vld [vmem:[%s2890_s0 + $0x1d8] sm:$0xff] }
  0x24   : > { %v291_v45 = vld [vmem:[%s2890_s0 + $0xc8] sm:$0xff]  ;;  %v276_v48 = vld [vmem:[%s2890_s0 + $0x50] sm:$0xff]  ;;  %v277_v52 = vld [vmem:[%s2890_s0 + $0x58] sm:$0xff] }
  0x25   : > { %v292_v49 = vld [vmem:[%s2890_s0 + $0xd0] sm:$0xff]  ;;  %v293_v53 = vld [vmem:[%s2890_s0 + $0xd8] sm:$0xff]  ;;  %v310_v54 = vld [vmem:[%s2890_s0 + $0x160] sm:$0xff] }
  0x26   : > { %1640 = vmatmul.msk.f32.gmra.mxu2 %vm335_vm1, %v299_v10  ;;  %1656 = vmatmul.msk.f32.gmra.mxu3 %vm335_vm1, %v315_v11  ;;  %v326_v55 = vld [vmem:[%s2890_s0 + $0x1e0] sm:$0xff]  ;;  %v311_v58 = vld [vmem:[%s2890_s0 + $0x168] sm:$0xff]  ;;  %v312_v62 = vld [vmem:[%s2890_s0 + $0x170] sm:$0xff] }
  0x27   : > { %v278_v56 = vld [vmem:[%s2890_s0 + $0x60] sm:$0xff]  ;;  %v327_v59 = vld [vmem:[%s2890_s0 + $0x1e8] sm:$0xff]  ;;  %v328_v63 = vld [vmem:[%s2890_s0 + $0x1f0] sm:$0xff] }
  0x28   : > { %1608 = vmatmul.msk.f32.gmra.mxu0 %vm335_vm1, %v267_v12  ;;  %1624 = vmatmul.msk.f32.gmra.mxu1 %vm335_vm1, %v283_v13  ;;  %v294_v57 = vld [vmem:[%s2890_s0 + $0xe0] sm:$0xff]  ;;  %v279_v60 = vld [vmem:[%s2890_s0 + $0x68] sm:$0xff]  ;;  %v280_v0 = vld [vmem:[%s2890_s0 + $0x70] sm:$0xff] }
  0x29   : > { %v295_v61 = vld [vmem:[%s2890_s0 + $0xe8] sm:$0xff]  ;;  %v296_v1 = vld [vmem:[%s2890_s0 + $0xf0] sm:$0xff]  ;;  %v313_v2 = vld [vmem:[%s2890_s0 + $0x178] sm:$0xff] }
  0x2a   : > { %v329_v3 = vld [vmem:[%s2890_s0 + $0x1f8] sm:$0xff] }
  0x2b   : > { %v281_v4 = vld [vmem:[%s2890_s0 + $0x78] sm:$0xff] }
  0x2c   : > { %v297_v5 = vld [vmem:[%s2890_s0 + $0xf8] sm:$0xff] }
  0x2e   : > { %1641 = vmatmul.msk.f32.gmra.mxu2 %vm335_vm1, %v300_v14  ;;  %1657 = vmatmul.msk.f32.gmra.mxu3 %vm335_vm1, %v316_v15 }
  0x30   : > { %1609 = vmatmul.msk.f32.gmra.mxu0 %vm335_vm1, %v268_v16  ;;  %1625 = vmatmul.msk.f32.gmra.mxu1 %vm335_vm1, %v284_v17 }
  0x36   : > { %1642 = vmatmul.msk.f32.gmra.mxu2 %vm335_vm1, %v301_v18  ;;  %1658 = vmatmul.msk.f32.gmra.mxu3 %vm335_vm1, %v317_v19 }
  0x38   : > { %1610 = vmatmul.msk.f32.gmra.mxu0 %vm335_vm1, %v269_v20  ;;  %1626 = vmatmul.msk.f32.gmra.mxu1 %vm335_vm1, %v285_v21 }
  0x3e   : > { %1643 = vmatmul.msk.f32.gmra.mxu2 %vm335_vm1, %v302_v22  ;;  %1659 = vmatmul.msk.f32.gmra.mxu3 %vm335_vm1, %v318_v23 }
  0x40   : > { %1611 = vmatmul.msk.f32.gmra.mxu0 %vm335_vm1, %v270_v24  ;;  %1627 = vmatmul.msk.f32.gmra.mxu1 %vm335_vm1, %v286_v25 }
  0x46   : > { %1644 = vmatmul.msk.f32.gmra.mxu2 %vm335_vm1, %v303_v26  ;;  %1660 = vmatmul.msk.f32.gmra.mxu3 %vm335_vm1, %v319_v27 }
  0x48   : > { %1612 = vmatmul.msk.f32.gmra.mxu0 %vm335_vm1, %v271_v28  ;;  %1628 = vmatmul.msk.f32.gmra.mxu1 %vm335_vm1, %v287_v29 }
  0x4e   : > { %1645 = vmatmul.msk.f32.gmra.mxu2 %vm335_vm1, %v304_v30  ;;  %1661 = vmatmul.msk.f32.gmra.mxu3 %vm335_vm1, %v320_v31 }
  0x50   : > { %1613 = vmatmul.msk.f32.gmra.mxu0 %vm335_vm1, %v272_v32  ;;  %1629 = vmatmul.msk.f32.gmra.mxu1 %vm335_vm1, %v288_v33 }
  0x56   : > { %1646 = vmatmul.msk.f32.gmra.mxu2 %vm335_vm1, %v305_v34  ;;  %1662 = vmatmul.msk.f32.gmra.mxu3 %vm335_vm1, %v321_v35 }
  0x58   : > { %1614 = vmatmul.msk.f32.gmra.mxu0 %vm335_vm1, %v273_v36  ;;  %1630 = vmatmul.msk.f32.gmra.mxu1 %vm335_vm1, %v289_v37 }
  0x5e   : > { %1647 = vmatmul.msk.f32.gmra.mxu2 %vm335_vm1, %v306_v38  ;;  %1663 = vmatmul.msk.f32.gmra.mxu3 %vm335_vm1, %v322_v39 }
  0x60   : > { %1615 = vmatmul.msk.f32.gmra.mxu0 %vm335_vm1, %v274_v40  ;;  %1631 = vmatmul.msk.f32.gmra.mxu1 %vm335_vm1, %v290_v41 }
  0x66   : > { %1648 = vmatmul.msk.f32.gmra.mxu2 %vm335_vm1, %v307_v42  ;;  %1664 = vmatmul.msk.f32.gmra.mxu3 %vm335_vm1, %v323_v43 }
  0x68   : > { %1616 = vmatmul.msk.f32.gmra.mxu0 %vm335_vm1, %v275_v44  ;;  %1632 = vmatmul.msk.f32.gmra.mxu1 %vm335_vm1, %v291_v45 }
  0x6e   : > { %1649 = vmatmul.msk.f32.gmra.mxu2 %vm335_vm1, %v308_v46  ;;  %1665 = vmatmul.msk.f32.gmra.mxu3 %vm335_vm1, %v324_v47 }
  0x70   : > { %1617 = vmatmul.msk.f32.gmra.mxu0 %vm335_vm1, %v276_v48  ;;  %1633 = vmatmul.msk.f32.gmra.mxu1 %vm335_vm1, %v292_v49 }
  0x76   : > { %1650 = vmatmul.msk.f32.gmra.mxu2 %vm335_vm1, %v309_v50  ;;  %1666 = vmatmul.msk.f32.gmra.mxu3 %vm335_vm1, %v325_v51 }
  0x78   : > { %1618 = vmatmul.msk.f32.gmra.mxu0 %vm335_vm1, %v277_v52  ;;  %1634 = vmatmul.msk.f32.gmra.mxu1 %vm335_vm1, %v293_v53 }
  0x7e   : > { %1651 = vmatmul.msk.f32.gmra.mxu2 %vm335_vm1, %v310_v54  ;;  %1667 = vmatmul.msk.f32.gmra.mxu3 %vm335_vm1, %v326_v55 }
  0x80   : > { %1619 = vmatmul.msk.f32.gmra.mxu0 %vm335_vm1, %v278_v56  ;;  %1635 = vmatmul.msk.f32.gmra.mxu1 %vm335_vm1, %v294_v57 }
  0x86   : > { %1652 = vmatmul.msk.f32.gmra.mxu2 %vm335_vm1, %v311_v58  ;;  %1668 = vmatmul.msk.f32.gmra.mxu3 %vm335_vm1, %v327_v59 }
  0x88   : > { %1620 = vmatmul.msk.f32.gmra.mxu0 %vm335_vm1, %v279_v60  ;;  %1636 = vmatmul.msk.f32.gmra.mxu1 %vm335_vm1, %v295_v61 }
  0x8e   : > { %1653 = vmatmul.msk.f32.gmra.mxu2 %vm335_vm1, %v312_v62  ;;  %1669 = vmatmul.msk.f32.gmra.mxu3 %vm335_vm1, %v328_v63 }
  0x90   : > { %1621 = vmatmul.msk.f32.gmra.mxu0 %vm335_vm1, %v280_v0  ;;  %1637 = vmatmul.msk.f32.gmra.mxu1 %vm335_vm1, %v296_v1 }
  0x96   : > { %1654 = vmatmul.msk.f32.gmra.mxu2 %vm335_vm1, %v313_v2  ;;  %1670 = vmatmul.msk.f32.gmra.mxu3 %vm335_vm1, %v329_v3 }
  0x98   : > { %1622 = vmatmul.msk.f32.gmra.mxu0 %vm335_vm1, %v281_v4  ;;  %1638 = vmatmul.msk.f32.gmra.mxu1 %vm335_vm1, %v297_v5 }
  0x9d   : > { %v2166_v6 = vpop.f32.mrf.mxu0  ;;  %v2168_v7 = vpop.f32.mrf.mxu1 }
  0x9e   : > { %2921 = vst [vmem:[#allocation7_spill] sm:$0xff] %v2166_v6 }
  0xa1   : > { %v2170_v8 = vpop.f32.mrf.mxu2  ;;  %v2172_v9 = vpop.f32.mrf.mxu3 }
  0xa5   : > { %v2174_v10 = vpop.f32.mrf.mxu0  ;;  %v2176_v11 = vpop.f32.mrf.mxu1 }
  0xa6   : > { %2922 = vst [vmem:[#allocation8_spill] sm:$0xff] %v2174_v10 }
  0xa9   : > { %v2178_v12 = vpop.f32.mrf.mxu2  ;;  %v2180_v13 = vpop.f32.mrf.mxu3 }
  0xad   : > { %v2182_v14 = vpop.f32.mrf.mxu0  ;;  %v2184_v15 = vpop.f32.mrf.mxu1 }
  0xae   : > { %2923 = vst [vmem:[#allocation9_spill] sm:$0xff] %v2182_v14 }
  0xb1   : > { %v2186_v16 = vpop.f32.mrf.mxu2  ;;  %v2188_v17 = vpop.f32.mrf.mxu3 }
  0xb5   : > { %v2190_v18 = vpop.f32.mrf.mxu0  ;;  %v2192_v19 = vpop.f32.mrf.mxu1 }
  0xb6   : > { %2924 = vst [vmem:[#allocation10_spill] sm:$0xff] %v2190_v18 }
  0xb9   : > { %v2194_v20 = vpop.f32.mrf.mxu2  ;;  %v2196_v21 = vpop.f32.mrf.mxu3 }
  0xbd   : > { %v2198_v22 = vpop.f32.mrf.mxu0  ;;  %v2200_v23 = vpop.f32.mrf.mxu1 }
  0xc1   : > { %v2202_v24 = vpop.f32.mrf.mxu2  ;;  %v2204_v25 = vpop.f32.mrf.mxu3 }
  0xc5   : > { %v2206_v26 = vpop.f32.mrf.mxu0  ;;  %v2208_v27 = vpop.f32.mrf.mxu1 }
  0xc9   : > { %v2210_v28 = vpop.f32.mrf.mxu2  ;;  %v2212_v29 = vpop.f32.mrf.mxu3 }
  0xcd   : > { %v2214_v30 = vpop.f32.mrf.mxu0  ;;  %v2216_v31 = vpop.f32.mrf.mxu1 }
  0xd1   : > { %v2218_v32 = vpop.f32.mrf.mxu2  ;;  %v2220_v33 = vpop.f32.mrf.mxu3 }
  0xd5   : > { %v2222_v34 = vpop.f32.mrf.mxu0  ;;  %v2224_v35 = vpop.f32.mrf.mxu1 }
  0xd9   : > { %v2226_v36 = vpop.f32.mrf.mxu2  ;;  %v2228_v37 = vpop.f32.mrf.mxu3 }
  0xdd   : > { %v2230_v38 = vpop.f32.mrf.mxu0  ;;  %v2232_v39 = vpop.f32.mrf.mxu1 }
  0xe1   : > { %v2234_v40 = vpop.f32.mrf.mxu2  ;;  %v2236_v41 = vpop.f32.mrf.mxu3 }
  0xe5   : > { %v2238_v42 = vpop.f32.mrf.mxu0  ;;  %v2240_v43 = vpop.f32.mrf.mxu1 }
  0xe9   : > { %v2242_v44 = vpop.f32.mrf.mxu2  ;;  %v2244_v45 = vpop.f32.mrf.mxu3 }
  0xea   : > { %2925 = vst [vmem:[#allocation11_spill] sm:$0xff] %v2244_v45 }
  0xed   : > { %v2246_v46 = vpop.f32.mrf.mxu0  ;;  %v2248_v47 = vpop.f32.mrf.mxu1 }
  0xee   : > { %2926 = vst [vmem:[#allocation12_spill] sm:$0xff] %v2248_v47 }
  0xf1   : > { %v2250_v48 = vpop.f32.mrf.mxu2  ;;  %v2252_v49 = vpop.f32.mrf.mxu3 }
  0xf2   : > { %2927 = vst [vmem:[#allocation13_spill] sm:$0xff] %v2252_v49 }
  0xf5   : > { %v2254_v50 = vpop.f32.mrf.mxu0  ;;  %v2256_v51 = vpop.f32.mrf.mxu1 }
  0xf6   : > { %2928 = vst [vmem:[#allocation14_spill] sm:$0xff] %v2254_v50 }
  0xf7   : > { %2929 = vst [vmem:[#allocation15_spill] sm:$0xff] %v2256_v51 }
  0xf9   : > { %v2258_v52 = vpop.f32.mrf.mxu2  ;;  %v2260_v53 = vpop.f32.mrf.mxu3 }
  0xfa   : > { %2930 = vst [vmem:[#allocation16_spill] sm:$0xff] %v2260_v53 }
  0xfd   : > { %v2262_v54 = vpop.f32.mrf.mxu0  ;;  %v2264_v55 = vpop.f32.mrf.mxu1 }
  0xfe   : > { %2931 = vst [vmem:[#allocation17_spill] sm:$0xff] %v2262_v54 }
  0xff   : > { %2932 = vst [vmem:[#allocation18_spill] sm:$0xff] %v2264_v55 }
 0x101   : > { %v2266_v56 = vpop.f32.mrf.mxu2  ;;  %v2268_v57 = vpop.f32.mrf.mxu3 }
 0x102   : > { %2933 = vst [vmem:[#allocation19_spill] sm:$0xff] %v2268_v57 }
 0x105   : > { %v2270_v58 = vpop.f32.mrf.mxu0  ;;  %v2272_v59 = vpop.f32.mrf.mxu1 }
 0x106   : > { %2934 = vst [vmem:[#allocation20_spill] sm:$0xff] %v2270_v58 }
 0x107   : > { %2935 = vst [vmem:[#allocation21_spill] sm:$0xff] %v2272_v59 }
 0x109   : > { %v2274_v60 = vpop.f32.mrf.mxu2  ;;  %v2276_v61 = vpop.f32.mrf.mxu3 }
 0x10a   : > { %2936 = vst [vmem:[#allocation22_spill] sm:$0xff] %v2276_v61 }
 0x10d   : > { %v2278_v62 = vpop.f32.mrf.mxu0  ;;  %v2280_v63 = vpop.f32.mrf.mxu1 }
 0x10e   : > { %2937 = vst [vmem:[#allocation23_spill] sm:$0xff] %v2278_v62 }
 0x10f   : > { %2938 = vst [vmem:[#allocation24_spill] sm:$0xff] %v2280_v63 }
 0x111   : > { %v2282_v0 = vpop.f32.mrf.mxu2  ;;  %v2284_v1 = vpop.f32.mrf.mxu3 }
 0x112   : > { %2939 = vst [vmem:[#allocation25_spill] sm:$0xff] %v2282_v0 }
 0x113   : > { %2940 = vst [vmem:[#allocation26_spill] sm:$0xff] %v2284_v1 }
 0x115   : > { %v2286_v2 = vpop.f32.mrf.mxu0  ;;  %v2288_v3 = vpop.f32.mrf.mxu1 }
 0x116   : > { %2941 = vst [vmem:[#allocation27_spill] sm:$0xff] %v2286_v2 }
 0x117   : > { %2942 = vst [vmem:[#allocation28_spill] sm:$0xff] %v2288_v3  ;;  %743 = sbr.rel (%p1671_p5) target bundleno = 427 (0x1ab), region = 52 }
 0x119   : > { %v2290_v4 = vpop.f32.mrf.mxu2  ;;  %v2292_v5 = vpop.f32.mrf.mxu3 }
 0x11a   : > { %2943 = vst [vmem:[#allocation29_spill] sm:$0xff] %v2290_v4 }
 0x11b   : > { %2944 = vst [vmem:[#allocation30_spill] sm:$0xff] %v2292_v5 }
 0x11c   : > { %v745_v61 = vadd.f32 %v2174_v10, %v2166_v6  ;;  %952 = vst [vmem:[#allocation4] sm:$0xff] %v2166_v6  ;;  %v817_v57 = vmul.f32 %v2166_v6, %v2166_v6  ;;  %v818_v1 = vmul.f32 %v2174_v10, %v2174_v10  ;;  %v819_v5 = vmul.f32 %v2182_v14, %v2182_v14 }
 0x11d   : > { %953 = vst [vmem:[#allocation4 + $0x8] sm:$0xff] %v2174_v10  ;;  %v820_v6 = vmul.f32 %v2190_v18, %v2190_v18 }
 0x11e   : > { %v746_v53 = vadd.f32 %v745_v61, %v2182_v14  ;;  %954 = vst [vmem:[#allocation4 + $0x10] sm:$0xff] %v2182_v14  ;;  %v881_v45 = vadd.f32 %v818_v1, %v817_v57  ;;  %v821_v61 = vmul.f32 %v2198_v22, %v2198_v22  ;;  %v823_v1 = vmul.f32 %v2214_v30, %v2214_v30 }
 0x11f   : > { %955 = vst [vmem:[#allocation4 + $0x18] sm:$0xff] %v2190_v18 }
 0x120   : > { %v747_v49 = vadd.f32 %v746_v53, %v2190_v18  ;;  %956 = vst [vmem:[#allocation4 + $0x20] sm:$0xff] %v2198_v22  ;;  %v882_v14 = vadd.f32 %v881_v45, %v819_v5  ;;  %v822_v18 = vmul.f32 %v2206_v26, %v2206_v26  ;;  %v824_v5 = vmul.f32 %v2222_v34, %v2222_v34 }
 0x121   : > { %957 = vst [vmem:[#allocation4 + $0x28] sm:$0xff] %v2206_v26 }
 0x122   : > { %v748_v10 = vadd.f32 %v747_v49, %v2198_v22  ;;  %958 = vst [vmem:[#allocation4 + $0x30] sm:$0xff] %v2214_v30  ;;  %v883_v57 = vadd.f32 %v882_v14, %v820_v6 }
 0x123   : > { %959 = vst [vmem:[#allocation4 + $0x38] sm:$0xff] %v2222_v34 }
 0x124   : > { %v749_v53 = vadd.f32 %v748_v10, %v2206_v26  ;;  %960 = vst [vmem:[#allocation4 + $0x40] sm:$0xff] %v2230_v38  ;;  %v884_v45 = vadd.f32 %v883_v57, %v821_v61 }
 0x125   : > { %961 = vst [vmem:[#allocation4 + $0x48] sm:$0xff] %v2238_v42 }
 0x126   : > { %v750_v49 = vadd.f32 %v749_v53, %v2214_v30  ;;  %962 = vst [vmem:[#allocation4 + $0x50] sm:$0xff] %v2246_v46  ;;  %v885_v6 = vadd.f32 %v884_v45, %v822_v18  ;;  %v825_v53 = vmul.f32 %v2230_v38, %v2230_v38 }
 0x127   : > { %963 = vst [vmem:[#allocation4 + $0x58] sm:$0xff] %v2254_v50 }
 0x128   : > { %v751_v10 = vadd.f32 %v750_v49, %v2222_v34  ;;  %964 = vst [vmem:[#allocation4 + $0x60] sm:$0xff] %v2262_v54  ;;  %v886_v61 = vadd.f32 %v885_v6, %v823_v1  ;;  %v826_v49 = vmul.f32 %v2238_v42, %v2238_v42 }
 0x129   : > { %965 = vst [vmem:[#allocation4 + $0x68] sm:$0xff] %v2270_v58 }
 0x12a   : > { %v752_v14 = vadd.f32 %v751_v10, %v2230_v38  ;;  %966 = vst [vmem:[#allocation4 + $0x70] sm:$0xff] %v2278_v62  ;;  %v887_v18 = vadd.f32 %v886_v61, %v824_v5  ;;  %v827_v10 = vmul.f32 %v2246_v46, %v2246_v46 }
 0x12b   : > { %967 = vst [vmem:[#allocation4 + $0x78] sm:$0xff] %v2286_v2 }
 0x12c   : > { %v753_v57 = vadd.f32 %v752_v14, %v2238_v42  ;;  %968 = vst [vmem:[#allocation4 + $0x80] sm:$0xff] %v2168_v7  ;;  %v888_v1 = vadd.f32 %v887_v18, %v825_v53  ;;  %v828_v14 = vmul.f32 %v2254_v50, %v2254_v50 }
 0x12d   : > { %969 = vst [vmem:[#allocation4 + $0x88] sm:$0xff] %v2176_v11 }
 0x12e   : > { %v754_v45 = vadd.f32 %v753_v57, %v2246_v46  ;;  %970 = vst [vmem:[#allocation4 + $0x90] sm:$0xff] %v2184_v15  ;;  %v889_v5 = vadd.f32 %v888_v1, %v826_v49  ;;  %v829_v57 = vmul.f32 %v2262_v54, %v2262_v54 }
 0x12f   : > { %971 = vst [vmem:[#allocation4 + $0x98] sm:$0xff] %v2192_v19 }
 0x130   : > { %v755_v6 = vadd.f32 %v754_v45, %v2254_v50  ;;  %972 = vst [vmem:[#allocation4 + $0xa0] sm:$0xff] %v2200_v23  ;;  %v890_v53 = vadd.f32 %v889_v5, %v827_v10  ;;  %v830_v45 = vmul.f32 %v2270_v58, %v2270_v58  ;;  %v852_v50 = vmul.f32 %v2194_v20, %v2194_v20 }
 0x131   : > { %973 = vst [vmem:[#allocation4 + $0xa8] sm:$0xff] %v2208_v27 }
 0x132   : > { %v756_v61 = vadd.f32 %v755_v6, %v2262_v54  ;;  %974 = vst [vmem:[#allocation4 + $0xb0] sm:$0xff] %v2216_v31  ;;  %v891_v49 = vadd.f32 %v890_v53, %v828_v14  ;;  %v831_v6 = vmul.f32 %v2278_v62, %v2278_v62  ;;  %v850_v54 = vmul.f32 %v2178_v12, %v2178_v12 }
 0x133   : > { %975 = vst [vmem:[#allocation4 + $0xb8] sm:$0xff] %v2224_v35 }
 0x134   : > { %v757_v18 = vadd.f32 %v756_v61, %v2270_v58  ;;  %976 = vst [vmem:[#allocation4 + $0xc0] sm:$0xff] %v2232_v39  ;;  %v892_v10 = vadd.f32 %v891_v49, %v829_v57  ;;  %v832_v61 = vmul.f32 %v2286_v2, %v2286_v2  ;;  %v2948_v58 = vld [vmem:[#allocation19_spill] sm:$0xff] }
 0x135   : > { %977 = vst [vmem:[#allocation4 + $0xc8] sm:$0xff] %v2240_v43 }
 0x136   : > { %v758_v1 = vadd.f32 %v757_v18, %v2278_v62  ;;  %978 = vst [vmem:[#allocation4 + $0xd0] sm:$0xff] %v2248_v47  ;;  %v893_v14 = vadd.f32 %v892_v10, %v830_v45  ;;  %v833_v18 = vmul.f32 %v2168_v7, %v2168_v7  ;;  %v847_v62 = vmul.f32 %v2280_v63, %v2280_v63 }
 0x137   : > { %979 = vst [vmem:[#allocation4 + $0xd8] sm:$0xff] %v2256_v51 }
 0x138   : > { %v759_v5 = vadd.f32 %v758_v1, %v2286_v2  ;;  %980 = vst [vmem:[#allocation4 + $0xe0] sm:$0xff] %v2264_v55  ;;  %v894_v57 = vadd.f32 %v893_v14, %v831_v6  ;;  %v834_v1 = vmul.f32 %v2176_v11, %v2176_v11  ;;  %v2946_v2 = vld [vmem:[#allocation13_spill] sm:$0xff] }
 0x139   : > { %981 = vst [vmem:[#allocation4 + $0xe8] sm:$0xff] %v2272_v59 }
 0x13a   : > { %v760_v53 = vadd.f32 %v759_v5, %v2168_v7  ;;  %982 = vst [vmem:[#allocation4 + $0xf0] sm:$0xff] %v2280_v63  ;;  %v895_v45 = vadd.f32 %v894_v57, %v832_v61  ;;  %v835_v5 = vmul.f32 %v2184_v15, %v2184_v15 }
 0x13b   : > { %983 = vst [vmem:[#allocation4 + $0xf8] sm:$0xff] %v2288_v3 }
 0x13c   : > { %v761_v49 = vadd.f32 %v760_v53, %v2176_v11  ;;  %984 = vst [vmem:[#allocation4 + $0x100] sm:$0xff] %v2170_v8  ;;  %v896_v6 = vadd.f32 %v895_v45, %v833_v18  ;;  %v836_v53 = vmul.f32 %v2192_v19, %v2192_v19 }
 0x13d   : > { %985 = vst [vmem:[#allocation4 + $0x108] sm:$0xff] %v2178_v12 }
 0x13e   : > { %v762_v10 = vadd.f32 %v761_v49, %v2184_v15  ;;  %986 = vst [vmem:[#allocation4 + $0x110] sm:$0xff] %v2186_v16  ;;  %v897_v61 = vadd.f32 %v896_v6, %v834_v1  ;;  %v837_v49 = vmul.f32 %v2200_v23, %v2200_v23 }
 0x13f   : > { %987 = vst [vmem:[#allocation4 + $0x118] sm:$0xff] %v2194_v20 }
 0x140   : > { %v763_v14 = vadd.f32 %v762_v10, %v2192_v19  ;;  %988 = vst [vmem:[#allocation4 + $0x120] sm:$0xff] %v2202_v24  ;;  %v898_v18 = vadd.f32 %v897_v61, %v835_v5  ;;  %v838_v10 = vmul.f32 %v2208_v27, %v2208_v27 }
 0x141   : > { %989 = vst [vmem:[#allocation4 + $0x128] sm:$0xff] %v2210_v28 }
 0x142   : > { %v764_v57 = vadd.f32 %v763_v14, %v2200_v23  ;;  %990 = vst [vmem:[#allocation4 + $0x130] sm:$0xff] %v2218_v32  ;;  %v899_v1 = vadd.f32 %v898_v18, %v836_v53  ;;  %v839_v14 = vmul.f32 %v2216_v31, %v2216_v31 }
 0x143   : > { %991 = vst [vmem:[#allocation4 + $0x138] sm:$0xff] %v2226_v36 }
 0x144   : > { %v765_v45 = vadd.f32 %v764_v57, %v2208_v27  ;;  %992 = vst [vmem:[#allocation4 + $0x140] sm:$0xff] %v2234_v40  ;;  %v900_v5 = vadd.f32 %v899_v1, %v837_v49  ;;  %v840_v57 = vmul.f32 %v2224_v35, %v2224_v35 }
 0x145   : > { %993 = vst [vmem:[#allocation4 + $0x148] sm:$0xff] %v2242_v44 }
 0x146   : > { %v766_v6 = vadd.f32 %v765_v45, %v2216_v31  ;;  %994 = vst [vmem:[#allocation4 + $0x150] sm:$0xff] %v2250_v48  ;;  %v901_v53 = vadd.f32 %v900_v5, %v838_v10  ;;  %v841_v45 = vmul.f32 %v2232_v39, %v2232_v39 }
 0x147   : > { %995 = vst [vmem:[#allocation4 + $0x158] sm:$0xff] %v2258_v52 }
 0x148   : > { %v767_v61 = vadd.f32 %v766_v6, %v2224_v35  ;;  %996 = vst [vmem:[#allocation4 + $0x160] sm:$0xff] %v2266_v56  ;;  %v902_v49 = vadd.f32 %v901_v53, %v839_v14  ;;  %v842_v6 = vmul.f32 %v2240_v43, %v2240_v43 }
 0x149   : > { %997 = vst [vmem:[#allocation4 + $0x168] sm:$0xff] %v2274_v60 }
 0x14a   : > { %v768_v18 = vadd.f32 %v767_v61, %v2232_v39  ;;  %998 = vst [vmem:[#allocation4 + $0x170] sm:$0xff] %v2282_v0  ;;  %v903_v10 = vadd.f32 %v902_v49, %v840_v57  ;;  %v843_v61 = vmul.f32 %v2248_v47, %v2248_v47 }
 0x14b   : > { %999 = vst [vmem:[#allocation4 + $0x178] sm:$0xff] %v2290_v4 }
 0x14c   : > { %v769_v1 = vadd.f32 %v768_v18, %v2240_v43  ;;  %1000 = vst [vmem:[#allocation4 + $0x180] sm:$0xff] %v2172_v9  ;;  %v904_v14 = vadd.f32 %v903_v10, %v841_v45  ;;  %v844_v18 = vmul.f32 %v2256_v51, %v2256_v51 }
 0x14d   : > { %1001 = vst [vmem:[#allocation4 + $0x188] sm:$0xff] %v2180_v13 }
 0x14e   : > { %v770_v5 = vadd.f32 %v769_v1, %v2248_v47  ;;  %1002 = vst [vmem:[#allocation4 + $0x190] sm:$0xff] %v2188_v17  ;;  %v905_v57 = vadd.f32 %v904_v14, %v842_v6  ;;  %v845_v1 = vmul.f32 %v2264_v55, %v2264_v55  ;;  %v2945_v14 = vld [vmem:[#allocation11_spill] sm:$0xff] }
 0x14f   : > { %1003 = vst [vmem:[#allocation4 + $0x198] sm:$0xff] %v2196_v21 }
 0x150   : > { %v771_v53 = vadd.f32 %v770_v5, %v2256_v51  ;;  %1004 = vst [vmem:[#allocation4 + $0x1a0] sm:$0xff] %v2204_v25  ;;  %v906_v45 = vadd.f32 %v905_v57, %v843_v61  ;;  %v846_v5 = vmul.f32 %v2272_v59, %v2272_v59  ;;  %v2947_v57 = vld [vmem:[#allocation16_spill] sm:$0xff] }
 0x151   : > { %1005 = vst [vmem:[#allocation4 + $0x1a8] sm:$0xff] %v2212_v29 }
 0x152   : > { %v772_v49 = vadd.f32 %v771_v53, %v2264_v55  ;;  %1006 = vst [vmem:[#allocation4 + $0x1b0] sm:$0xff] %v2220_v33  ;;  %v907_v6 = vadd.f32 %v906_v45, %v844_v18  ;;  %v2949_v45 = vld [vmem:[#allocation22_spill] sm:$0xff] }
 0x153   : > { %1007 = vst [vmem:[#allocation4 + $0x1b8] sm:$0xff] %v2228_v37  ;;  %v2950_v55 = vld [vmem:[#allocation26_spill] sm:$0xff] }
 0x154   : > { %v773_v10 = vadd.f32 %v772_v49, %v2272_v59  ;;  %1008 = vst [vmem:[#allocation4 + $0x1c0] sm:$0xff] %v2236_v41  ;;  %v908_v61 = vadd.f32 %v907_v6, %v845_v1  ;;  %v848_v59 = vmul.f32 %v2288_v3, %v2288_v3  ;;  %v2951_v6 = vld [vmem:[#allocation30_spill] sm:$0xff] }
 0x155   : > { %1009 = vst [vmem:[#allocation4 + $0x1c8] sm:$0xff] %v2945_v14 }
 0x156   : > { %v774_v53 = vadd.f32 %v773_v10, %v2280_v63  ;;  %1010 = vst [vmem:[#allocation4 + $0x1d0] sm:$0xff] %v2946_v2  ;;  %v909_v18 = vadd.f32 %v908_v61, %v846_v5  ;;  %v849_v63 = vmul.f32 %v2170_v8, %v2170_v8  ;;  %v851_v61 = vmul.f32 %v2186_v16, %v2186_v16 }
 0x157   : > { %1011 = vst [vmem:[#allocation4 + $0x1d8] sm:$0xff] %v2947_v57 }
 0x158   : > { %v775_v49 = vadd.f32 %v774_v53, %v2288_v3  ;;  %1012 = vst [vmem:[#allocation4 + $0x1e0] sm:$0xff] %v2948_v58  ;;  %v910_v1 = vadd.f32 %v909_v18, %v847_v62 }
 0x159   : > { %1013 = vst [vmem:[#allocation4 + $0x1e8] sm:$0xff] %v2949_v45 }
 0x15a   : > { %v776_v10 = vadd.f32 %v775_v49, %v2170_v8  ;;  %1014 = vst [vmem:[#allocation4 + $0x1f0] sm:$0xff] %v2950_v55  ;;  %v911_v51 = vadd.f32 %v910_v1, %v848_v59  ;;  %v854_v1 = vmul.f32 %v2210_v28, %v2210_v28 }
 0x15b   : > { %1015 = vst [vmem:[#allocation4 + $0x1f8] sm:$0xff] %v2951_v6 }
 0x15c   : > { %v777_v53 = vadd.f32 %v776_v10, %v2178_v12  ;;  %v912_v49 = vadd.f32 %v911_v51, %v849_v63  ;;  %v853_v10 = vmul.f32 %v2202_v24, %v2202_v24  ;;  %v855_v63 = vmul.f32 %v2218_v32, %v2218_v32 }
 0x15e   : > { %v778_v5 = vadd.f32 %v777_v53, %v2186_v16  ;;  %v913_v62 = vadd.f32 %v912_v49, %v850_v54 }
 0x160   : > { %v779_v3 = vadd.f32 %v778_v5, %v2194_v20  ;;  %v914_v47 = vadd.f32 %v913_v62, %v851_v61  ;;  %v857_v62 = vmul.f32 %v2234_v40, %v2234_v40 }
 0x162   : > { %v780_v18 = vadd.f32 %v779_v3, %v2202_v24  ;;  %v915_v53 = vadd.f32 %v914_v47, %v852_v50  ;;  %v856_v3 = vmul.f32 %v2226_v36, %v2226_v36  ;;  %v858_v50 = vmul.f32 %v2242_v44, %v2242_v44 }
 0x164   : > { %v781_v59 = vadd.f32 %v780_v18, %v2210_v28  ;;  %v916_v5 = vadd.f32 %v915_v53, %v853_v10  ;;  %v859_v53 = vmul.f32 %v2250_v48, %v2250_v48 }
 0x166   : > { %v782_v51 = vadd.f32 %v781_v59, %v2218_v32  ;;  %v917_v49 = vadd.f32 %v916_v5, %v854_v1  ;;  %v860_v5 = vmul.f32 %v2258_v52, %v2258_v52 }
 0x168   : > { %v783_v54 = vadd.f32 %v782_v51, %v2226_v36  ;;  %v918_v18 = vadd.f32 %v917_v49, %v855_v63  ;;  %v861_v49 = vmul.f32 %v2266_v56, %v2266_v56 }
 0x16a   : > { %v784_v61 = vadd.f32 %v783_v54, %v2234_v40  ;;  %v919_v59 = vadd.f32 %v918_v18, %v856_v3  ;;  %v862_v18 = vmul.f32 %v2274_v60, %v2274_v60 }
 0x16c   : > { %v785_v47 = vadd.f32 %v784_v61, %v2242_v44  ;;  %v920_v51 = vadd.f32 %v919_v59, %v857_v62  ;;  %v863_v59 = vmul.f32 %v2282_v0, %v2282_v0 }
 0x16e   : > { %v786_v10 = vadd.f32 %v785_v47, %v2250_v48  ;;  %v921_v54 = vadd.f32 %v920_v51, %v858_v50  ;;  %v864_v51 = vmul.f32 %v2290_v4, %v2290_v4 }
 0x170   : > { %v787_v1 = vadd.f32 %v786_v10, %v2258_v52  ;;  %v922_v61 = vadd.f32 %v921_v54, %v859_v53  ;;  %v865_v54 = vmul.f32 %v2172_v9, %v2172_v9 }
 0x172   : > { %v788_v63 = vadd.f32 %v787_v1, %v2266_v56  ;;  %v923_v47 = vadd.f32 %v922_v61, %v860_v5  ;;  %v866_v61 = vmul.f32 %v2180_v13, %v2180_v13 }
 0x174   : > { %v789_v3 = vadd.f32 %v788_v63, %v2274_v60  ;;  %v924_v10 = vadd.f32 %v923_v47, %v861_v49  ;;  %v867_v47 = vmul.f32 %v2188_v17, %v2188_v17 }
 0x176   : > { %v790_v62 = vadd.f32 %v789_v3, %v2282_v0  ;;  %v925_v1 = vadd.f32 %v924_v10, %v862_v18  ;;  %v868_v10 = vmul.f32 %v2196_v21, %v2196_v21 }
 0x178   : > { %v791_v50 = vadd.f32 %v790_v62, %v2290_v4  ;;  %v926_v63 = vadd.f32 %v925_v1, %v863_v59  ;;  %v869_v1 = vmul.f32 %v2204_v25, %v2204_v25 }
 0x17a   : > { %v792_v53 = vadd.f32 %v791_v50, %v2172_v9  ;;  %v927_v3 = vadd.f32 %v926_v63, %v864_v51  ;;  %v870_v63 = vmul.f32 %v2212_v29, %v2212_v29 }
 0x17c   : > { %v793_v5 = vadd.f32 %v792_v53, %v2180_v13  ;;  %v928_v62 = vadd.f32 %v927_v3, %v865_v54  ;;  %v871_v3 = vmul.f32 %v2220_v33, %v2220_v33 }
 0x17e   : > { %v794_v49 = vadd.f32 %v793_v5, %v2188_v17  ;;  %v929_v50 = vadd.f32 %v928_v62, %v866_v61  ;;  %v872_v62 = vmul.f32 %v2228_v37, %v2228_v37 }
 0x180   : > { %v795_v18 = vadd.f32 %v794_v49, %v2196_v21  ;;  %v930_v53 = vadd.f32 %v929_v50, %v867_v47  ;;  %v873_v50 = vmul.f32 %v2236_v41, %v2236_v41 }
 0x182   : > { %v796_v59 = vadd.f32 %v795_v18, %v2204_v25  ;;  %v931_v5 = vadd.f32 %v930_v53, %v868_v10  ;;  %v874_v53 = vmul.f32 %v2945_v14, %v2945_v14 }
 0x184   : > { %v797_v51 = vadd.f32 %v796_v59, %v2212_v29  ;;  %v932_v49 = vadd.f32 %v931_v5, %v869_v1  ;;  %v875_v5 = vmul.f32 %v2946_v2, %v2946_v2 }
 0x186   : > { %v798_v54 = vadd.f32 %v797_v51, %v2220_v33  ;;  %v933_v18 = vadd.f32 %v932_v49, %v870_v63  ;;  %v876_v49 = vmul.f32 %v2947_v57, %v2947_v57 }
 0x188   : > { %v799_v61 = vadd.f32 %v798_v54, %v2228_v37  ;;  %v934_v59 = vadd.f32 %v933_v18, %v871_v3  ;;  %v877_v18 = vmul.f32 %v2948_v58, %v2948_v58 }
 0x18a   : > { %v800_v47 = vadd.f32 %v799_v61, %v2236_v41  ;;  %v935_v51 = vadd.f32 %v934_v59, %v872_v62  ;;  %v878_v62 = vmul.f32 %v2949_v45, %v2949_v45 }
 0x18c   : > { %v801_v10 = vadd.f32 %v800_v47, %v2945_v14  ;;  %v936_v54 = vadd.f32 %v935_v51, %v873_v50  ;;  %v879_v50 = vmul.f32 %v2950_v55, %v2950_v55 }
 0x18e   : > { %v802_v1 = vadd.f32 %v801_v10, %v2946_v2  ;;  %v937_v61 = vadd.f32 %v936_v54, %v874_v53  ;;  %v880_v53 = vmul.f32 %v2951_v6, %v2951_v6 }
 0x190   : > { %v803_v63 = vadd.f32 %v802_v1, %v2947_v57  ;;  %v938_v47 = vadd.f32 %v937_v61, %v875_v5 }
 0x192   : > { %v804_v3 = vadd.f32 %v803_v63, %v2948_v58  ;;  %v939_v59 = vadd.f32 %v938_v47, %v876_v49  ;;  %v744_v47 = vld [vmem:[#allocation2] sm:$0x1] }
 0x194   : > { %v805_v14 = vadd.f32 %v804_v3, %v2949_v45  ;;  %v940_v10 = vadd.f32 %v939_v59, %v877_v18 }
 0x196   : > { %v806_v2 = vadd.f32 %v805_v14, %v2950_v55  ;;  %v941_v51 = vadd.f32 %v940_v10, %v878_v62 }
 0x198   : > { %v807_v57 = vadd.f32 %v806_v2, %v2951_v6  ;;  %v942_v1 = vadd.f32 %v941_v51, %v879_v50  ;;  %v816_v2 = vld [vmem:[#allocation3] sm:$0x1] }
 0x19a   : > { %v808_v58 = vrot.slane %v807_v57, 4  ;;  %v943_v54 = vadd.f32 %v942_v1, %v880_v53 }
 0x19c   : > { %v809_v5 = vadd.f32 %v808_v58, %v807_v57  ;;  %v944_v61 = vrot.slane %v943_v54, 4 }
 0x19e   : > { %v810_v63 = vrot.slane %v809_v5, 2  ;;  %v945_v49 = vadd.f32 %v944_v61, %v943_v54 }
 0x1a0   : > { %v811_v45 = vadd.f32 %v810_v63, %v809_v5  ;;  %v946_v14 = vrot.slane %v945_v49, 2 }
 0x1a2   : > { %v812_v3 = vrot.slane %v811_v45, 1  ;;  %v947_v55 = vadd.f32 %v946_v14, %v945_v49 }
 0x1a4   : > { %v813_v4 = vadd.f32 %v812_v3, %v811_v45  ;;  %v948_v59 = vrot.slane %v947_v55, 1 }
 0x1a6   : > { %v814_v18 = vadd.f32 %v813_v4, %v744_v47  ;;  %v949_v0 = vadd.f32 %v948_v59, %v947_v55 }
 0x1a8   : > { %815 = vst [vmem:[#allocation2] sm:$0x1] %v814_v18  ;;  %v950_v6 = vadd.f32 %v949_v0, %v816_v2 }
 0x1aa   : > { %951 = vst [vmem:[#allocation3] sm:$0x1] %v950_v6 }
 0x1ab PF: > { %p1672_p6 = scmp.ne.s32.totalorder %s1824_s21, 1 }
 0x1ad   : > { %1019 = sbr.rel (%p1672_p6) target bundleno = 733 (0x2dd), region = 56 }
 0x1b2   : > { %v1256_v62 = vld [vmem:[%s2894_s4 + $0x78] sm:$0xff]  ;;  %v1255_v50 = vld [vmem:[%s2894_s4 + $0x70] sm:$0xff]  ;;  %v1254_v4 = vld [vmem:[%s2894_s4 + $0x68] sm:$0xff] }
 0x1b3   : > { %1694 = vmatpush.msra.mxu2 %v1256_v62  ;;  %1695 = vmatpush.msra.mxu3 %v1256_v62  ;;  %v1253_v0 = vld [vmem:[%s2894_s4 + $0x60] sm:$0xff]  ;;  %v1252_v53 = vld [vmem:[%s2894_s4 + $0x58] sm:$0xff]  ;;  %v1251_v1 = vld [vmem:[%s2894_s4 + $0x50] sm:$0xff] }
 0x1b4   : > { %1261 = vmatpush.msra.mxu0 %v1256_v62  ;;  %1693 = vmatpush.msra.mxu1 %v1256_v62  ;;  %v1020_v10 = vld [vmem:[#allocation2] sm:$0x1]  ;;  %v1022_v57 = vld [vmem:[#allocation3] sm:$0x1]  ;;  %v1250_v54 = vld [vmem:[%s2894_s4 + $0x48] sm:$0xff] }
 0x1b5   : > { %1697 = vmatpush.msra.mxu2 %v1255_v50  ;;  %1698 = vmatpush.msra.mxu3 %v1255_v50  ;;  %v2567_v51 = vmul.f32 0.001953125, %v1020_v10  ;;  %v1023_v58 = vmul.f32 0.001953125, %v1022_v57  ;;  %v1249_v61 = vld [vmem:[%s2894_s4 + $0x40] sm:$0xff]  ;;  %v1248_v49 = vld [vmem:[%s2894_s4 + $0x38] sm:$0xff]  ;;  %v1247_v47 = vld [vmem:[%s2894_s4 + $0x30] sm:$0xff] }
 0x1b6   : > { %1262 = vmatpush.msra.mxu0 %v1255_v50  ;;  %1696 = vmatpush.msra.mxu1 %v1255_v50  ;;  %v1246_v14 = vld [vmem:[%s2894_s4 + $0x28] sm:$0xff]  ;;  %v1245_v55 = vld [vmem:[%s2894_s4 + $0x20] sm:$0xff]  ;;  %v1244_v59 = vld [vmem:[%s2894_s4 + $0x18] sm:$0xff] }
 0x1b7   : > { %1700 = vmatpush.msra.mxu2 %v1254_v4  ;;  %1701 = vmatpush.msra.mxu3 %v1254_v4  ;;  %v1024_v5 = vmul.f32 %v2567_v51, %v2567_v51  ;;  %v1243_v6 = vld [vmem:[%s2894_s4 + $0x10] sm:$0xff]  ;;  %v1242_v50 = vld [vmem:[%s2894_s4 + $0x8] sm:$0xff]  ;;  %v1027_v57 = vld [vmem:[%s2892_s2] sm:$0x1] }
 0x1b8   : > { %1263 = vmatpush.msra.mxu0 %v1254_v4  ;;  %1699 = vmatpush.msra.mxu1 %v1254_v4 }
 0x1b9   : > { %1703 = vmatpush.msra.mxu2 %v1253_v0  ;;  %1704 = vmatpush.msra.mxu3 %v1253_v0  ;;  %v1025_v63 = vsub.f32 %v1023_v58, %v1024_v5  ;;  %v1040_v5 = vld [vmem:[%s2893_s3] sm:$0x1] }
 0x1ba   : > { %1264 = vmatpush.msra.mxu0 %v1253_v0  ;;  %1702 = vmatpush.msra.mxu1 %v1253_v0  ;;  %v1241_v0 = vld [vmem:[%s2894_s4] sm:$0xff] }
 0x1bb   : > { %1706 = vmatpush.msra.mxu2 %v1252_v53  ;;  %1707 = vmatpush.msra.mxu3 %v1252_v53  ;;  %v1026_v45 = vmax.f32 %v1025_v63, 0.0 }
 0x1bc   : > { %1265 = vmatpush.msra.mxu0 %v1252_v53  ;;  %1705 = vmatpush.msra.mxu1 %v1252_v53 }
 0x1bd   : > { %1709 = vmatpush.msra.mxu2 %v1251_v1  ;;  %1710 = vmatpush.msra.mxu3 %v1251_v1  ;;  %v1028_v3 = vadd.f32 1e-05, %v1026_v45 }
 0x1be   : > { %1266 = vmatpush.msra.mxu0 %v1251_v1  ;;  %1708 = vmatpush.msra.mxu1 %v1251_v1 }
 0x1bf   : > { %1712 = vmatpush.msra.mxu2 %v1250_v54  ;;  %1713 = vmatpush.msra.mxu3 %v1250_v54  ;;  %1776 = vrsqrt.f32 %v1028_v3  ;;  %vm1035_vm2 = vweird.f32 %v1028_v3 }
 0x1c0   : > { %1267 = vmatpush.msra.mxu0 %v1250_v54  ;;  %1711 = vmatpush.msra.mxu1 %v1250_v54 }
 0x1c1   : > { %1715 = vmatpush.msra.mxu2 %v1249_v61  ;;  %1716 = vmatpush.msra.mxu3 %v1249_v61 }
 0x1c2   : > { %1268 = vmatpush.msra.mxu0 %v1249_v61  ;;  %1714 = vmatpush.msra.mxu1 %v1249_v61 }
 0x1c3   : > { %1718 = vmatpush.msra.mxu2 %v1248_v49  ;;  %1719 = vmatpush.msra.mxu3 %v1248_v49 }
 0x1c4   : > { %1269 = vmatpush.msra.mxu0 %v1248_v49  ;;  %1717 = vmatpush.msra.mxu1 %v1248_v49 }
 0x1c5   : > { %1721 = vmatpush.msra.mxu2 %v1247_v47  ;;  %1722 = vmatpush.msra.mxu3 %v1247_v47  ;;  %v1777_v18 = vpop.eup %1776 }
 0x1c6   : > { %1270 = vmatpush.msra.mxu0 %v1247_v47  ;;  %1720 = vmatpush.msra.mxu1 %v1247_v47  ;;  %v1030_v2 = vmul.f32 %v1777_v18, %v1028_v3  ;;  %vm1036_vm3 = vweird.f32 %v1777_v18  ;;  %v2952_v3 = vld [vmem:[#allocation7_spill] sm:$0xff] }
 0x1c7   : > { %1724 = vmatpush.msra.mxu2 %v1246_v14  ;;  %1725 = vmatpush.msra.mxu3 %v1246_v14  ;;  %vm1037_vm4 = vmor %vm1035_vm2, %vm1036_vm3 }
 0x1c8   : > { %1271 = vmatpush.msra.mxu0 %v1246_v14  ;;  %1723 = vmatpush.msra.mxu1 %v1246_v14  ;;  %v1031_v62 = vmul.f32 %v1777_v18, %v1030_v2 }
 0x1c9   : > { %1727 = vmatpush.msra.mxu2 %v1245_v55  ;;  %1728 = vmatpush.msra.mxu3 %v1245_v55 }
 0x1ca   : > { %1272 = vmatpush.msra.mxu0 %v1245_v55  ;;  %1726 = vmatpush.msra.mxu1 %v1245_v55  ;;  %v1032_v4 = vmul.f32 0.5, %v1031_v62 }
 0x1cb   : > { %1730 = vmatpush.msra.mxu2 %v1244_v59  ;;  %1731 = vmatpush.msra.mxu3 %v1244_v59 }
 0x1cc   : > { %1273 = vmatpush.msra.mxu0 %v1244_v59  ;;  %1729 = vmatpush.msra.mxu1 %v1244_v59  ;;  %v1033_v10 = vsub.f32 1.5, %v1032_v4 }
 0x1cd   : > { %1733 = vmatpush.msra.mxu2 %v1243_v6  ;;  %1734 = vmatpush.msra.mxu3 %v1243_v6 }
 0x1ce   : > { %1274 = vmatpush.msra.mxu0 %v1243_v6  ;;  %1732 = vmatpush.msra.mxu1 %v1243_v6  ;;  %v1034_v53 = vmul.f32 %v1777_v18, %v1033_v10  ;;  %v2953_v6 = vld [vmem:[#allocation8_spill] sm:$0xff] }
 0x1cf   : > { %1736 = vmatpush.msra.mxu2 %v1242_v50  ;;  %1737 = vmatpush.msra.mxu3 %v1242_v50 }
 0x1d0   : > { %1275 = vmatpush.msra.mxu0 %v1242_v50  ;;  %1735 = vmatpush.msra.mxu1 %v1242_v50  ;;  %v1038_v58 = vsel %vm1037_vm4, %v1777_v18, %v1034_v53 }
 0x1d1   : > { %1739 = vmatpush.msra.mxu2 %v1241_v0  ;;  %1740 = vmatpush.msra.mxu3 %v1241_v0  ;;  %v1039_v1 = vmul.f32 %v1038_v58, %v1027_v57 }
 0x1d2   : > { %1276 = vmatpush.msra.mxu0 %v1241_v0  ;;  %1738 = vmatpush.msra.mxu1 %v1241_v0 }
 0x1d3   : > { %v1041_v54 = vmul.f32 %v1039_v1, %v2567_v51  ;;  %v2611_v63 = vperm.slane %v1039_v1, 0 }
 0x1d5   : > { %v1042_v61 = vsub.f32 %v1040_v5, %v1041_v54  ;;  %v1078_v45 = vmul.f32 %v2611_v63, %v2170_v8  ;;  %v1094_v49 = vmul.f32 %v2611_v63, %v2172_v9  ;;  %v1046_v47 = vmul.f32 %v2611_v63, %v2952_v3 }
 0x1d6   : > { %v1062_v14 = vmul.f32 %v2611_v63, %v2168_v7  ;;  %v1079_v51 = vmul.f32 %v2611_v63, %v2178_v12  ;;  %v1095_v18 = vmul.f32 %v2611_v63, %v2180_v13  ;;  %v1047_v62 = vmul.f32 %v2611_v63, %v2953_v6 }
 0x1d7   : > { %v2621_v55 = vperm.slane %v1042_v61, 0  ;;  %v1063_v7 = vmul.f32 %v2611_v63, %v2176_v11  ;;  %v1080_v11 = vmul.f32 %v2611_v63, %v2186_v16  ;;  %v1096_v5 = vmul.f32 %v2611_v63, %v2188_v17 }
 0x1d8   : > { %v1064_v3 = vmul.f32 %v2611_v63, %v2184_v15  ;;  %v1097_v15 = vmul.f32 %v2611_v63, %v2196_v21 }
 0x1d9   : > { %v1145_v59 = vadd.f32 %v2621_v55, %v1078_v45  ;;  %v1161_v8 = vadd.f32 %v2621_v55, %v1094_v49  ;;  %v1113_v9 = vadd.f32 %v2621_v55, %v1046_v47  ;;  %v1129_v2 = vadd.f32 %v2621_v55, %v1062_v14  ;;  %v2954_v45 = vld [vmem:[#allocation9_spill] sm:$0xff] }
 0x1da   : > { %v1146_v13 = vadd.f32 %v2621_v55, %v1079_v51  ;;  %v1162_v10 = vadd.f32 %v2621_v55, %v1095_v18  ;;  %v1114_v57 = vadd.f32 %v2621_v55, %v1047_v62  ;;  %v1130_v53 = vadd.f32 %v2621_v55, %v1063_v7 }
 0x1db   : > { %v1209_v50 = vmax.f32 %v1145_v59, 0.0  ;;  %v1225_v4 = vmax.f32 %v1161_v8, 0.0  ;;  %v1177_v12 = vmax.f32 %v1113_v9, 0.0  ;;  %v1193_v0 = vmax.f32 %v1129_v2, 0.0  ;;  %v2955_v2 = vld [vmem:[#allocation10_spill] sm:$0xff] }
 0x1dc   : > { %v1210_v58 = vmax.f32 %v1146_v13, 0.0  ;;  %v1226_v1 = vmax.f32 %v1162_v10, 0.0  ;;  %v1178_v54 = vmax.f32 %v1114_v57, 0.0  ;;  %v1194_v61 = vmax.f32 %v1130_v53, 0.0 }
 0x1dd   : > { %1373 = vmatmul.f32.vlgmr.msra.gmra.mxu2 %v1209_v50  ;;  %1421 = vmatmul.f32.vlgmr.msra.gmra.mxu3 %v1225_v4  ;;  %v1048_v49 = vmul.f32 %v2611_v63, %v2954_v45  ;;  %v1147_v47 = vadd.f32 %v2621_v55, %v1080_v11  ;;  %v1163_v14 = vadd.f32 %v2621_v55, %v1096_v5 }
 0x1de   : > { %1277 = vmatmul.f32.vlgmr.msra.gmra.mxu0 %v1177_v12  ;;  %1325 = vmatmul.f32.vlgmr.msra.gmra.mxu1 %v1193_v0  ;;  %v1131_v17 = vadd.f32 %v2621_v55, %v1064_v3  ;;  %v1081_v59 = vmul.f32 %v2611_v63, %v2194_v20  ;;  %v1049_v6 = vmul.f32 %v2611_v63, %v2955_v2 }
 0x1df   : > { %v1115_v16 = vadd.f32 %v2621_v55, %v1048_v49  ;;  %v1211_v51 = vmax.f32 %v1147_v47, 0.0  ;;  %v1227_v18 = vmax.f32 %v1163_v14, 0.0  ;;  %v1065_v62 = vmul.f32 %v2611_v63, %v2192_v19 }
 0x1e0   : > { %v1195_v9 = vmax.f32 %v1131_v17, 0.0  ;;  %v1148_v7 = vadd.f32 %v2621_v55, %v1081_v59  ;;  %v1164_v50 = vadd.f32 %v2621_v55, %v1097_v15  ;;  %v1116_v20 = vadd.f32 %v2621_v55, %v1049_v6 }
 0x1e1   : > { %v1179_v8 = vmax.f32 %v1115_v16, 0.0  ;;  %v1132_v21 = vadd.f32 %v2621_v55, %v1065_v62  ;;  %v1082_v0 = vmul.f32 %v2611_v63, %v2202_v24  ;;  %v1098_v19 = vmul.f32 %v2611_v63, %v2204_v25 }
 0x1e2   : > { %v1212_v4 = vmax.f32 %v1148_v7, 0.0  ;;  %v1228_v12 = vmax.f32 %v1164_v50, 0.0  ;;  %v1180_v13 = vmax.f32 %v1116_v20, 0.0  ;;  %v1050_v57 = vmul.f32 %v2611_v63, %v2198_v22 }
 0x1e3   : > { %v1196_v10 = vmax.f32 %v1132_v21, 0.0  ;;  %v1066_v53 = vmul.f32 %v2611_v63, %v2200_v23  ;;  %v1083_v22 = vmul.f32 %v2611_v63, %v2210_v28  ;;  %v1099_v23 = vmul.f32 %v2611_v63, %v2212_v29 }
 0x1e4   : > { %v1117_v24 = vadd.f32 %v2621_v55, %v1050_v57  ;;  %v1051_v45 = vmul.f32 %v2611_v63, %v2206_v26  ;;  %v1067_v49 = vmul.f32 %v2611_v63, %v2208_v27  ;;  %v1084_v26 = vmul.f32 %v2611_v63, %v2218_v32 }
 0x1e5   : > { %1376 = vmatmul.f32.gmra.mxu2 %v1210_v58  ;;  %1424 = vmatmul.f32.gmra.mxu3 %v1226_v1  ;;  %v1149_v58 = vadd.f32 %v2621_v55, %v1082_v0  ;;  %v1165_v1 = vadd.f32 %v2621_v55, %v1098_v19  ;;  %v1133_v25 = vadd.f32 %v2621_v55, %v1066_v53 }
 0x1e6   : > { %1280 = vmatmul.f32.gmra.mxu0 %v1178_v54  ;;  %1328 = vmatmul.f32.gmra.mxu1 %v1194_v61  ;;  %v1181_v54 = vmax.f32 %v1117_v24, 0.0  ;;  %v1150_v3 = vadd.f32 %v2621_v55, %v1083_v22  ;;  %v1166_v47 = vadd.f32 %v2621_v55, %v1099_v23  ;;  %v1118_v28 = vadd.f32 %v2621_v55, %v1051_v45  ;;  %v2956_v24 = vld [vmem:[#allocation11_spill] sm:$0xff] }
 0x1e7   : > { %v1213_v11 = vmax.f32 %v1149_v58, 0.0  ;;  %v1229_v5 = vmax.f32 %v1165_v1, 0.0  ;;  %v1197_v61 = vmax.f32 %v1133_v25, 0.0  ;;  %v1134_v29 = vadd.f32 %v2621_v55, %v1067_v49 }
 0x1e8   : > { %v1214_v14 = vmax.f32 %v1150_v3, 0.0  ;;  %v1230_v16 = vmax.f32 %v1166_v47, 0.0  ;;  %v1100_v27 = vmul.f32 %v2611_v63, %v2220_v33  ;;  %v1182_v17 = vmax.f32 %v1118_v28, 0.0  ;;  %v2957_v3 = vld [vmem:[#allocation13_spill] sm:$0xff] }
 0x1e9   : > { %v1068_v59 = vmul.f32 %v2611_v63, %v2216_v31  ;;  %v1151_v15 = vadd.f32 %v2621_v55, %v1084_v26  ;;  %v1101_v31 = vmul.f32 %v2611_v63, %v2228_v37  ;;  %v1053_v7 = vmul.f32 %v2611_v63, %v2222_v34 }
 0x1ea   : > { %v1069_v50 = vmul.f32 %v2611_v63, %v2224_v35  ;;  %v1086_v34 = vmul.f32 %v2611_v63, %v2234_v40  ;;  %v1102_v35 = vmul.f32 %v2611_v63, %v2236_v41  ;;  %v1071_v22 = vmul.f32 %v2611_v63, %v2240_v43 }
 0x1eb   : > { %v1135_v33 = vadd.f32 %v2621_v55, %v1068_v59  ;;  %v1168_v21 = vadd.f32 %v2621_v55, %v1101_v31  ;;  %v1104_v43 = vmul.f32 %v2611_v63, %v2957_v3  ;;  %v2959_v59 = vld [vmem:[#allocation16_spill] sm:$0xff] }
 0x1ec   : > { %v1136_v37 = vadd.f32 %v2621_v55, %v1069_v50  ;;  %v1153_v57 = vadd.f32 %v2621_v55, %v1086_v34  ;;  %v1169_v53 = vadd.f32 %v2621_v55, %v1102_v35  ;;  %v2964_v35 = vld [vmem:[#allocation18_spill] sm:$0xff] }
 0x1ed   : > { %1379 = vmatmul.f32.gmra.mxu2 %v1211_v51  ;;  %1427 = vmatmul.f32.gmra.mxu3 %v1227_v18  ;;  %v1198_v51 = vmax.f32 %v1134_v29, 0.0  ;;  %v1052_v18 = vmul.f32 %v2611_v63, %v2214_v30  ;;  %v1085_v30 = vmul.f32 %v2611_v63, %v2226_v36  ;;  %v1199_v62 = vmax.f32 %v1135_v33, 0.0  ;;  %v2960_v33 = vld [vmem:[#allocation14_spill] sm:$0xff] }
 0x1ee   : > { %1283 = vmatmul.f32.gmra.mxu0 %v1179_v8  ;;  %1331 = vmatmul.f32.gmra.mxu1 %v1195_v9  ;;  %v1167_v8 = vadd.f32 %v2621_v55, %v1100_v27  ;;  %v1215_v9 = vmax.f32 %v1151_v15, 0.0  ;;  %v1120_v36 = vadd.f32 %v2621_v55, %v1053_v7  ;;  %v1200_v19 = vmax.f32 %v1136_v37, 0.0 }
 0x1ef   : > { %v1119_v32 = vadd.f32 %v2621_v55, %v1052_v18  ;;  %v1152_v20 = vadd.f32 %v2621_v55, %v1085_v30  ;;  %v1217_v58 = vmax.f32 %v1153_v57, 0.0  ;;  %v1233_v1 = vmax.f32 %v1169_v53, 0.0 }
 0x1f0   : > { %v1231_v2 = vmax.f32 %v1167_v8, 0.0  ;;  %v1184_v0 = vmax.f32 %v1120_v36, 0.0  ;;  %v1056_v29 = vmul.f32 %v2611_v63, %v2246_v46  ;;  %v1171_v27 = vadd.f32 %v2621_v55, %v1104_v43 }
 0x1f1   : > { %v1183_v6 = vmax.f32 %v1119_v32, 0.0  ;;  %v1089_v46 = vmul.f32 %v2611_v63, %v2258_v52  ;;  %v1105_v15 = vmul.f32 %v2611_v63, %v2959_v59  ;;  %v2973_v59 = vld [vmem:[#allocation30_spill] sm:$0xff] }
 0x1f2   : > { %v1235_v18 = vmax.f32 %v1171_v27, 0.0 }
 0x1f3   : > { %v1156_v31 = vadd.f32 %v2621_v55, %v1089_v46 }
 0x1f5   : > { %1382 = vmatmul.f32.gmra.mxu2 %v1212_v4  ;;  %1430 = vmatmul.f32.gmra.mxu3 %v1228_v12  ;;  %v1216_v4 = vmax.f32 %v1152_v20, 0.0  ;;  %v1232_v12 = vmax.f32 %v1168_v21, 0.0  ;;  %v1220_v7 = vmax.f32 %v1156_v31, 0.0  ;;  %v1090_v20 = vmul.f32 %v2611_v63, %v2266_v56  ;;  %v2962_v21 = vld [vmem:[#allocation19_spill] sm:$0xff] }
 0x1f6   : > { %1286 = vmatmul.f32.gmra.mxu0 %v1180_v13  ;;  %1334 = vmatmul.f32.gmra.mxu1 %v1196_v10  ;;  %v1054_v13 = vmul.f32 %v2611_v63, %v2230_v38  ;;  %v1070_v10 = vmul.f32 %v2611_v63, %v2232_v39  ;;  %v1087_v38 = vmul.f32 %v2611_v63, %v2242_v44 }
 0x1f7   : > { %v1103_v39 = vmul.f32 %v2611_v63, %v2956_v24  ;;  %v1106_v36 = vmul.f32 %v2611_v63, %v2962_v21  ;;  %v2966_v24 = vld [vmem:[#allocation20_spill] sm:$0xff] }
 0x1f8   : > { %v1121_v40 = vadd.f32 %v2621_v55, %v1054_v13  ;;  %v1137_v41 = vadd.f32 %v2621_v55, %v1070_v10  ;;  %v1154_v23 = vadd.f32 %v2621_v55, %v1087_v38 }
 0x1f9   : > { %v1173_v13 = vadd.f32 %v2621_v55, %v1106_v36 }
 0x1fa   : > { %v1185_v25 = vmax.f32 %v1121_v40, 0.0  ;;  %v1218_v45 = vmax.f32 %v1154_v23, 0.0  ;;  %v1091_v40 = vmul.f32 %v2611_v63, %v2274_v60 }
 0x1fb   : > { %v1237_v53 = vmax.f32 %v1173_v13, 0.0 }
 0x1fd   : > { %1385 = vmatmul.f32.gmra.mxu2 %v1213_v11  ;;  %1433 = vmatmul.f32.gmra.mxu3 %v1229_v5  ;;  %v1201_v11 = vmax.f32 %v1137_v41, 0.0  ;;  %v1055_v5 = vmul.f32 %v2611_v63, %v2238_v42  ;;  %v1088_v42 = vmul.f32 %v2611_v63, %v2250_v48  ;;  %v1123_v48 = vadd.f32 %v2621_v55, %v1056_v29  ;;  %v2965_v41 = vld [vmem:[#allocation22_spill] sm:$0xff]  ;;  %v2971_v29 = vld [vmem:[#allocation24_spill] sm:$0xff] }
 0x1fe   : > { %1289 = vmatmul.f32.gmra.mxu0 %v1181_v54  ;;  %1337 = vmatmul.f32.gmra.mxu1 %v1197_v61  ;;  %v1170_v54 = vadd.f32 %v2621_v55, %v1103_v39  ;;  %v1138_v61 = vadd.f32 %v2621_v55, %v1071_v22  ;;  %v1059_v39 = vmul.f32 %v2611_v63, %v2966_v24 }
 0x1ff   : > { %v1122_v44 = vadd.f32 %v2621_v55, %v1055_v5  ;;  %v1155_v26 = vadd.f32 %v2621_v55, %v1088_v42  ;;  %v1187_v8 = vmax.f32 %v1123_v48, 0.0  ;;  %v1158_v5 = vadd.f32 %v2621_v55, %v1091_v40 }
 0x200   : > { %v1234_v49 = vmax.f32 %v1170_v54, 0.0  ;;  %v1202_v28 = vmax.f32 %v1138_v61, 0.0  ;;  %v1126_v60 = vadd.f32 %v2621_v55, %v1059_v39  ;;  %v2968_v61 = vld [vmem:[#allocation25_spill] sm:$0xff] }
 0x201   : > { %v1186_v47 = vmax.f32 %v1122_v44, 0.0  ;;  %v1222_v54 = vmax.f32 %v1158_v5, 0.0 }
 0x202   : > { %v1190_v3 = vmax.f32 %v1126_v60, 0.0 }
 0x205   : > { %1388 = vmatmul.f32.gmra.mxu2 %v1214_v14  ;;  %1436 = vmatmul.f32.gmra.mxu3 %v1230_v16  ;;  %v2958_v14 = vld [vmem:[#allocation12_spill] sm:$0xff] }
 0x206   : > { %1292 = vmatmul.f32.gmra.mxu0 %v1182_v17  ;;  %1340 = vmatmul.f32.gmra.mxu1 %v1198_v51  ;;  %v1072_v16 = vmul.f32 %v2611_v63, %v2958_v14  ;;  %v1219_v51 = vmax.f32 %v1155_v26, 0.0  ;;  %v1076_v14 = vmul.f32 %v2611_v63, %v2971_v29 }
 0x208   : > { %v1139_v17 = vadd.f32 %v2621_v55, %v1072_v16  ;;  %v1143_v48 = vadd.f32 %v2621_v55, %v1076_v14 }
 0x20a   : > { %v1203_v32 = vmax.f32 %v1139_v17, 0.0 }
 0x20d   : > { %1391 = vmatmul.f32.gmra.mxu2 %v1215_v9  ;;  %1439 = vmatmul.f32.gmra.mxu3 %v1231_v2  ;;  %v1057_v9 = vmul.f32 %v2611_v63, %v2960_v33  ;;  %v2961_v2 = vld [vmem:[#allocation15_spill] sm:$0xff] }
 0x20e   : > { %1295 = vmatmul.f32.gmra.mxu0 %v1183_v6  ;;  %1343 = vmatmul.f32.gmra.mxu1 %v1199_v62  ;;  %v1073_v30 = vmul.f32 %v2611_v63, %v2961_v2  ;;  %v1172_v6 = vadd.f32 %v2621_v55, %v1105_v15  ;;  %v1109_v15 = vmul.f32 %v2611_v63, %v2973_v59  ;;  %v2974_v33 = vld [vmem:[#allocation27_spill] sm:$0xff]  ;;  %v2975_v2 = vld [vmem:[#allocation28_spill] sm:$0xff] }
 0x20f   : > { %v1124_v52 = vadd.f32 %v2621_v55, %v1057_v9  ;;  %v1061_v9 = vmul.f32 %v2611_v63, %v2974_v33 }
 0x210   : > { %v1140_v62 = vadd.f32 %v2621_v55, %v1073_v30  ;;  %v1236_v50 = vmax.f32 %v1172_v6, 0.0  ;;  %v1077_v30 = vmul.f32 %v2611_v63, %v2975_v2  ;;  %v1176_v6 = vadd.f32 %v2621_v55, %v1109_v15 }
 0x211   : > { %v1188_v37 = vmax.f32 %v1124_v52, 0.0  ;;  %v1128_v52 = vadd.f32 %v2621_v55, %v1061_v9 }
 0x215   : > { %1394 = vmatmul.f32.gmra.mxu2 %v1216_v4  ;;  %1442 = vmatmul.f32.gmra.mxu3 %v1232_v12  ;;  %v1204_v4 = vmax.f32 %v1140_v62, 0.0  ;;  %v2963_v12 = vld [vmem:[#allocation17_spill] sm:$0xff]  ;;  %v1144_v62 = vadd.f32 %v2621_v55, %v1077_v30 }
 0x216   : > { %1298 = vmatmul.f32.gmra.mxu0 %v1184_v0  ;;  %1346 = vmatmul.f32.gmra.mxu1 %v1200_v19  ;;  %v1058_v34 = vmul.f32 %v2611_v63, %v2963_v12  ;;  %v1074_v0 = vmul.f32 %v2611_v63, %v2964_v35  ;;  %v1157_v19 = vadd.f32 %v2621_v55, %v1090_v20  ;;  %v1192_v20 = vmax.f32 %v1128_v52, 0.0 }
 0x217   : > { %v1208_v21 = vmax.f32 %v1144_v62, 0.0 }
 0x218   : > { %v1125_v56 = vadd.f32 %v2621_v55, %v1058_v34  ;;  %v1141_v10 = vadd.f32 %v2621_v55, %v1074_v0  ;;  %v1221_v57 = vmax.f32 %v1157_v19, 0.0 }
 0x21a   : > { %v1205_v38 = vmax.f32 %v1141_v10, 0.0 }
 0x21d   : > { %1397 = vmatmul.f32.gmra.mxu2 %v1217_v58  ;;  %1445 = vmatmul.f32.gmra.mxu3 %v1233_v1  ;;  %v1107_v58 = vmul.f32 %v2611_v63, %v2965_v41  ;;  %v1189_v1 = vmax.f32 %v1125_v56, 0.0 }
 0x21e   : > { %1301 = vmatmul.f32.gmra.mxu0 %v1185_v25  ;;  %1349 = vmatmul.f32.gmra.mxu1 %v1201_v11  ;;  %v2967_v25 = vld [vmem:[#allocation21_spill] sm:$0xff] }
 0x21f   : > { %v1075_v11 = vmul.f32 %v2611_v63, %v2967_v25  ;;  %v1174_v22 = vadd.f32 %v2621_v55, %v1107_v58 }
 0x221   : > { %v1142_v23 = vadd.f32 %v2621_v55, %v1075_v11  ;;  %v1238_v44 = vmax.f32 %v1174_v22, 0.0 }
 0x223   : > { %v1206_v43 = vmax.f32 %v1142_v23, 0.0 }
 0x225   : > { %1400 = vmatmul.f32.gmra.mxu2 %v1218_v45  ;;  %1448 = vmatmul.f32.gmra.mxu3 %v1234_v49  ;;  %v1092_v45 = vmul.f32 %v2611_v63, %v2968_v61  ;;  %v2969_v49 = vld [vmem:[#allocation26_spill] sm:$0xff] }
 0x226   : > { %1304 = vmatmul.f32.gmra.mxu0 %v1186_v47  ;;  %1352 = vmatmul.f32.gmra.mxu1 %v1202_v28  ;;  %v1108_v42 = vmul.f32 %v2611_v63, %v2969_v49  ;;  %v2970_v47 = vld [vmem:[#allocation23_spill] sm:$0xff] }
 0x227   : > { %v1060_v28 = vmul.f32 %v2611_v63, %v2970_v47  ;;  %v1159_v16 = vadd.f32 %v2621_v55, %v1092_v45 }
 0x228   : > { %v1175_v26 = vadd.f32 %v2621_v55, %v1108_v42 }
 0x229   : > { %v1127_v27 = vadd.f32 %v2621_v55, %v1060_v28  ;;  %v1223_v17 = vmax.f32 %v1159_v16, 0.0 }
 0x22d   : > { %1403 = vmatmul.f32.gmra.mxu2 %v1219_v51  ;;  %1451 = vmatmul.f32.gmra.mxu3 %v1235_v18  ;;  %v1239_v51 = vmax.f32 %v1175_v26, 0.0  ;;  %v2972_v18 = vld [vmem:[#allocation29_spill] sm:$0xff] }
 0x22e   : > { %1307 = vmatmul.f32.gmra.mxu0 %v1187_v8  ;;  %1355 = vmatmul.f32.gmra.mxu1 %v1203_v32  ;;  %v1093_v46 = vmul.f32 %v2611_v63, %v2972_v18  ;;  %v1191_v8 = vmax.f32 %v1127_v27, 0.0  ;;  %v1207_v32 = vmax.f32 %v1143_v48, 0.0  ;;  %v2810_v63 = vld [vmem:[%s2895_s5] ss:$0 sm:$0xff] }
 0x230   : > { %v1160_v31 = vadd.f32 %v2621_v55, %v1093_v46 }
 0x235   : > { %1406 = vmatmul.f32.gmra.mxu2 %v1220_v7  ;;  %1454 = vmatmul.f32.gmra.mxu3 %v1236_v50  ;;  %v1224_v7 = vmax.f32 %v1160_v31, 0.0  ;;  %v1240_v50 = vmax.f32 %v1176_v6, 0.0 }
 0x236   : > { %1310 = vmatmul.f32.gmra.mxu0 %v1188_v37  ;;  %1358 = vmatmul.f32.gmra.mxu1 %v1204_v4 }
 0x23d   : > { %1409 = vmatmul.f32.gmra.mxu2 %v1221_v57  ;;  %1457 = vmatmul.f32.gmra.mxu3 %v1237_v53 }
 0x23e   : > { %1313 = vmatmul.f32.gmra.mxu0 %v1189_v1  ;;  %1361 = vmatmul.f32.gmra.mxu1 %v1205_v38 }
 0x245   : > { %1412 = vmatmul.f32.gmra.mxu2 %v1222_v54  ;;  %1460 = vmatmul.f32.gmra.mxu3 %v1238_v44 }
 0x246   : > { %1316 = vmatmul.f32.gmra.mxu0 %v1190_v3  ;;  %1364 = vmatmul.f32.gmra.mxu1 %v1206_v43 }
 0x24d   : > { %1415 = vmatmul.f32.gmra.mxu2 %v1223_v17  ;;  %1463 = vmatmul.f32.gmra.mxu3 %v1239_v51 }
 0x24e   : > { %1319 = vmatmul.f32.gmra.mxu0 %v1191_v8  ;;  %1367 = vmatmul.f32.gmra.mxu1 %v1207_v32 }
 0x255   : > { %1418 = vmatmul.f32.gmra.mxu2 %v1224_v7  ;;  %1466 = vmatmul.f32.gmra.mxu3 %v1240_v50 }
 0x256   : > { %1322 = vmatmul.f32.gmra.mxu0 %v1192_v20  ;;  %1370 = vmatmul.f32.gmra.mxu1 %v1208_v21 }
 0x25b   : > { %v1278_v36 = vpop.f32.mrf.mxu0  ;;  %v1326_v37 = vpop.f32.mrf.mxu1 }
 0x25c   : > { %v1279_v4 = vadd.f32 %v2810_v63, %v1278_v36  ;;  %v1327_v12 = vadd.f32 %v2810_v63, %v1326_v37 }
 0x25e   : > { %1470 = vst [vmem:[#allocation4] sm:$0xff] %v1279_v4 }
 0x25f   : > { %1486 = vst [vmem:[#allocation4 + $0x80] sm:$0xff] %v1327_v12 }
 0x260   : > { %v1374_v55 = vpop.f32.mrf.mxu2  ;;  %v1422_v34 = vpop.f32.mrf.mxu3 }
 0x261   : > { %v1375_v35 = vadd.f32 %v2810_v63, %v1374_v55  ;;  %v1423_v0 = vadd.f32 %v2810_v63, %v1422_v34 }
 0x263   : > { %1502 = vst [vmem:[#allocation4 + $0x100] sm:$0xff] %v1375_v35  ;;  %v1281_v19 = vpop.f32.mrf.mxu0  ;;  %v1329_v13 = vpop.f32.mrf.mxu1 }
 0x264   : > { %1518 = vst [vmem:[#allocation4 + $0x180] sm:$0xff] %v1423_v0  ;;  %v1282_v56 = vadd.f32 %v2810_v63, %v1281_v19  ;;  %v1330_v10 = vadd.f32 %v2810_v63, %v1329_v13 }
 0x266   : > { %1471 = vst [vmem:[#allocation4 + $0x8] sm:$0xff] %v1282_v56 }
 0x267   : > { %1487 = vst [vmem:[#allocation4 + $0x88] sm:$0xff] %v1330_v10 }
 0x268   : > { %v1377_v57 = vpop.f32.mrf.mxu2  ;;  %v1425_v53 = vpop.f32.mrf.mxu3 }
 0x269   : > { %v1378_v40 = vadd.f32 %v2810_v63, %v1377_v57  ;;  %v1426_v41 = vadd.f32 %v2810_v63, %v1425_v53 }
 0x26b   : > { %1503 = vst [vmem:[#allocation4 + $0x108] sm:$0xff] %v1378_v40  ;;  %v1284_v58 = vpop.f32.mrf.mxu0  ;;  %v1332_v1 = vpop.f32.mrf.mxu1 }
 0x26c   : > { %1519 = vst [vmem:[#allocation4 + $0x188] sm:$0xff] %v1426_v41  ;;  %v1285_v38 = vadd.f32 %v2810_v63, %v1284_v58  ;;  %v1333_v24 = vadd.f32 %v2810_v63, %v1332_v1 }
 0x26e   : > { %1472 = vst [vmem:[#allocation4 + $0x10] sm:$0xff] %v1285_v38 }
 0x26f   : > { %1488 = vst [vmem:[#allocation4 + $0x90] sm:$0xff] %v1333_v24 }
 0x270   : > { %v1380_v39 = vpop.f32.mrf.mxu2  ;;  %v1428_v25 = vpop.f32.mrf.mxu3 }
 0x271   : > { %v1381_v11 = vadd.f32 %v2810_v63, %v1380_v39  ;;  %v1429_v5 = vadd.f32 %v2810_v63, %v1428_v25 }
 0x273   : > { %1504 = vst [vmem:[#allocation4 + $0x110] sm:$0xff] %v1381_v11  ;;  %v1287_v22 = vpop.f32.mrf.mxu0  ;;  %v1335_v60 = vpop.f32.mrf.mxu1 }
 0x274   : > { %1520 = vst [vmem:[#allocation4 + $0x190] sm:$0xff] %v1429_v5  ;;  %v1288_v23 = vadd.f32 %v2810_v63, %v1287_v22  ;;  %v1336_v54 = vadd.f32 %v2810_v63, %v1335_v60 }
 0x276   : > { %1473 = vst [vmem:[#allocation4 + $0x18] sm:$0xff] %v1288_v23 }
 0x277   : > { %1489 = vst [vmem:[#allocation4 + $0x98] sm:$0xff] %v1336_v54 }
 0x278   : > { %v1383_v44 = vpop.f32.mrf.mxu2  ;;  %v1431_v61 = vpop.f32.mrf.mxu3 }
 0x279   : > { %v1384_v45 = vadd.f32 %v2810_v63, %v1383_v44  ;;  %v1432_v49 = vadd.f32 %v2810_v63, %v1431_v61 }
 0x27b   : > { %1505 = vst [vmem:[#allocation4 + $0x118] sm:$0xff] %v1384_v45  ;;  %v1290_v42 = vpop.f32.mrf.mxu0  ;;  %v1338_v3 = vpop.f32.mrf.mxu1 }
 0x27c   : > { %1521 = vst [vmem:[#allocation4 + $0x198] sm:$0xff] %v1432_v49  ;;  %v1291_v43 = vadd.f32 %v2810_v63, %v1290_v42  ;;  %v1339_v47 = vadd.f32 %v2810_v63, %v1338_v3 }
 0x27e   : > { %1474 = vst [vmem:[#allocation4 + $0x20] sm:$0xff] %v1291_v43 }
 0x27f   : > { %1490 = vst [vmem:[#allocation4 + $0xa0] sm:$0xff] %v1339_v47 }
 0x280   : > { %v1386_v28 = vpop.f32.mrf.mxu2  ;;  %v1434_v29 = vpop.f32.mrf.mxu3 }
 0x281   : > { %v1387_v14 = vadd.f32 %v2810_v63, %v1386_v28  ;;  %v1435_v16 = vadd.f32 %v2810_v63, %v1434_v29 }
 0x283   : > { %1506 = vst [vmem:[#allocation4 + $0x120] sm:$0xff] %v1387_v14  ;;  %v1293_v26 = vpop.f32.mrf.mxu0  ;;  %v1341_v27 = vpop.f32.mrf.mxu1 }
 0x284   : > { %1522 = vst [vmem:[#allocation4 + $0x1a0] sm:$0xff] %v1435_v16  ;;  %v1294_v48 = vadd.f32 %v2810_v63, %v1293_v26  ;;  %v1342_v17 = vadd.f32 %v2810_v63, %v1341_v27 }
 0x286   : > { %1475 = vst [vmem:[#allocation4 + $0x28] sm:$0xff] %v1294_v48 }
 0x287   : > { %1491 = vst [vmem:[#allocation4 + $0xa8] sm:$0xff] %v1342_v17 }
 0x288   : > { %v1389_v51 = vpop.f32.mrf.mxu2  ;;  %v1437_v18 = vpop.f32.mrf.mxu3 }
 0x289   : > { %v1390_v46 = vadd.f32 %v2810_v63, %v1389_v51  ;;  %v1438_v59 = vadd.f32 %v2810_v63, %v1437_v18 }
 0x28b   : > { %1507 = vst [vmem:[#allocation4 + $0x128] sm:$0xff] %v1390_v46  ;;  %v1296_v15 = vpop.f32.mrf.mxu0  ;;  %v1344_v8 = vpop.f32.mrf.mxu1 }
 0x28c   : > { %1523 = vst [vmem:[#allocation4 + $0x1a8] sm:$0xff] %v1438_v59  ;;  %v1297_v32 = vadd.f32 %v2810_v63, %v1296_v15  ;;  %v1345_v33 = vadd.f32 %v2810_v63, %v1344_v8 }
 0x28e   : > { %1476 = vst [vmem:[#allocation4 + $0x30] sm:$0xff] %v1297_v32 }
 0x28f   : > { %1492 = vst [vmem:[#allocation4 + $0xb0] sm:$0xff] %v1345_v33 }
 0x290   : > { %v1392_v9 = vpop.f32.mrf.mxu2  ;;  %v1440_v2 = vpop.f32.mrf.mxu3 }
 0x291   : > { %v1393_v30 = vadd.f32 %v2810_v63, %v1392_v9  ;;  %v1441_v31 = vadd.f32 %v2810_v63, %v1440_v2 }
 0x293   : > { %1508 = vst [vmem:[#allocation4 + $0x130] sm:$0xff] %v1393_v30  ;;  %v1299_v6 = vpop.f32.mrf.mxu0  ;;  %v1347_v52 = vpop.f32.mrf.mxu1 }
 0x294   : > { %1524 = vst [vmem:[#allocation4 + $0x1b0] sm:$0xff] %v1441_v31  ;;  %v1300_v62 = vadd.f32 %v2810_v63, %v1299_v6  ;;  %v1348_v7 = vadd.f32 %v2810_v63, %v1347_v52 }
 0x296   : > { %1477 = vst [vmem:[#allocation4 + $0x38] sm:$0xff] %v1300_v62 }
 0x297   : > { %1493 = vst [vmem:[#allocation4 + $0xb8] sm:$0xff] %v1348_v7 }
 0x298   : > { %v1395_v50 = vpop.f32.mrf.mxu2  ;;  %v1443_v20 = vpop.f32.mrf.mxu3 }
 0x299   : > { %v1396_v21 = vadd.f32 %v2810_v63, %v1395_v50  ;;  %v1444_v36 = vadd.f32 %v2810_v63, %v1443_v20 }
 0x29b   : > { %1509 = vst [vmem:[#allocation4 + $0x138] sm:$0xff] %v1396_v21  ;;  %v1302_v37 = vpop.f32.mrf.mxu0  ;;  %v1350_v4 = vpop.f32.mrf.mxu1 }
 0x29c   : > { %1525 = vst [vmem:[#allocation4 + $0x1b8] sm:$0xff] %v1444_v36  ;;  %v1303_v12 = vadd.f32 %v2810_v63, %v1302_v37  ;;  %v1351_v55 = vadd.f32 %v2810_v63, %v1350_v4 }
 0x29e   : > { %1478 = vst [vmem:[#allocation4 + $0x40] sm:$0xff] %v1303_v12 }
 0x29f   : > { %1494 = vst [vmem:[#allocation4 + $0xc0] sm:$0xff] %v1351_v55 }
 0x2a0   : > { %v1398_v34 = vpop.f32.mrf.mxu2  ;;  %v1446_v35 = vpop.f32.mrf.mxu3 }
 0x2a1   : > { %v1399_v0 = vadd.f32 %v2810_v63, %v1398_v34  ;;  %v1447_v19 = vadd.f32 %v2810_v63, %v1446_v35 }
 0x2a3   : > { %1510 = vst [vmem:[#allocation4 + $0x140] sm:$0xff] %v1399_v0  ;;  %v1305_v13 = vpop.f32.mrf.mxu0  ;;  %v1353_v56 = vpop.f32.mrf.mxu1 }
 0x2a4   : > { %1526 = vst [vmem:[#allocation4 + $0x1c0] sm:$0xff] %v1447_v19  ;;  %v1306_v10 = vadd.f32 %v2810_v63, %v1305_v13  ;;  %v1354_v57 = vadd.f32 %v2810_v63, %v1353_v56 }
 0x2a6   : > { %1479 = vst [vmem:[#allocation4 + $0x48] sm:$0xff] %v1306_v10 }
 0x2a7   : > { %1495 = vst [vmem:[#allocation4 + $0xc8] sm:$0xff] %v1354_v57 }
 0x2a8   : > { %v1401_v53 = vpop.f32.mrf.mxu2  ;;  %v1449_v40 = vpop.f32.mrf.mxu3 }
 0x2a9   : > { %v1402_v41 = vadd.f32 %v2810_v63, %v1401_v53  ;;  %v1450_v58 = vadd.f32 %v2810_v63, %v1449_v40 }
 0x2ab   : > { %1511 = vst [vmem:[#allocation4 + $0x148] sm:$0xff] %v1402_v41  ;;  %v1308_v1 = vpop.f32.mrf.mxu0  ;;  %v1356_v38 = vpop.f32.mrf.mxu1 }
 0x2ac   : > { %1527 = vst [vmem:[#allocation4 + $0x1c8] sm:$0xff] %v1450_v58  ;;  %v1309_v24 = vadd.f32 %v2810_v63, %v1308_v1  ;;  %v1357_v39 = vadd.f32 %v2810_v63, %v1356_v38 }
 0x2ae   : > { %1480 = vst [vmem:[#allocation4 + $0x50] sm:$0xff] %v1309_v24 }
 0x2af   : > { %1496 = vst [vmem:[#allocation4 + $0xd0] sm:$0xff] %v1357_v39 }
 0x2b0   : > { %v1404_v25 = vpop.f32.mrf.mxu2  ;;  %v1452_v11 = vpop.f32.mrf.mxu3 }
 0x2b1   : > { %v1405_v5 = vadd.f32 %v2810_v63, %v1404_v25  ;;  %v1453_v22 = vadd.f32 %v2810_v63, %v1452_v11 }
 0x2b3   : > { %1512 = vst [vmem:[#allocation4 + $0x150] sm:$0xff] %v1405_v5  ;;  %v1311_v60 = vpop.f32.mrf.mxu0  ;;  %v1359_v23 = vpop.f32.mrf.mxu1 }
 0x2b4   : > { %1528 = vst [vmem:[#allocation4 + $0x1d0] sm:$0xff] %v1453_v22  ;;  %v1312_v54 = vadd.f32 %v2810_v63, %v1311_v60  ;;  %v1360_v44 = vadd.f32 %v2810_v63, %v1359_v23 }
 0x2b6   : > { %1481 = vst [vmem:[#allocation4 + $0x58] sm:$0xff] %v1312_v54 }
 0x2b7   : > { %1497 = vst [vmem:[#allocation4 + $0xd8] sm:$0xff] %v1360_v44 }
 0x2b8   : > { %v1407_v61 = vpop.f32.mrf.mxu2  ;;  %v1455_v45 = vpop.f32.mrf.mxu3 }
 0x2b9   : > { %v1408_v49 = vadd.f32 %v2810_v63, %v1407_v61  ;;  %v1456_v42 = vadd.f32 %v2810_v63, %v1455_v45 }
 0x2bb   : > { %1513 = vst [vmem:[#allocation4 + $0x158] sm:$0xff] %v1408_v49  ;;  %v1314_v3 = vpop.f32.mrf.mxu0  ;;  %v1362_v43 = vpop.f32.mrf.mxu1 }
 0x2bc   : > { %1529 = vst [vmem:[#allocation4 + $0x1d8] sm:$0xff] %v1456_v42  ;;  %v1315_v47 = vadd.f32 %v2810_v63, %v1314_v3  ;;  %v1363_v28 = vadd.f32 %v2810_v63, %v1362_v43 }
 0x2be   : > { %1482 = vst [vmem:[#allocation4 + $0x60] sm:$0xff] %v1315_v47 }
 0x2bf   : > { %1498 = vst [vmem:[#allocation4 + $0xe0] sm:$0xff] %v1363_v28 }
 0x2c0   : > { %v1410_v29 = vpop.f32.mrf.mxu2  ;;  %v1458_v14 = vpop.f32.mrf.mxu3 }
 0x2c1   : > { %v1411_v16 = vadd.f32 %v2810_v63, %v1410_v29  ;;  %v1459_v26 = vadd.f32 %v2810_v63, %v1458_v14 }
 0x2c3   : > { %1514 = vst [vmem:[#allocation4 + $0x160] sm:$0xff] %v1411_v16  ;;  %v1317_v27 = vpop.f32.mrf.mxu0  ;;  %v1365_v48 = vpop.f32.mrf.mxu1 }
 0x2c4   : > { %1530 = vst [vmem:[#allocation4 + $0x1e0] sm:$0xff] %v1459_v26  ;;  %v1318_v17 = vadd.f32 %v2810_v63, %v1317_v27  ;;  %v1366_v51 = vadd.f32 %v2810_v63, %v1365_v48 }
 0x2c6   : > { %1483 = vst [vmem:[#allocation4 + $0x68] sm:$0xff] %v1318_v17 }
 0x2c7   : > { %1499 = vst [vmem:[#allocation4 + $0xe8] sm:$0xff] %v1366_v51 }
 0x2c8   : > { %v1413_v18 = vpop.f32.mrf.mxu2  ;;  %v1461_v46 = vpop.f32.mrf.mxu3 }
 0x2c9   : > { %v1414_v59 = vadd.f32 %v2810_v63, %v1413_v18  ;;  %v1462_v15 = vadd.f32 %v2810_v63, %v1461_v46 }
 0x2cb   : > { %1515 = vst [vmem:[#allocation4 + $0x168] sm:$0xff] %v1414_v59  ;;  %v1320_v8 = vpop.f32.mrf.mxu0  ;;  %v1368_v32 = vpop.f32.mrf.mxu1 }
 0x2cc   : > { %1531 = vst [vmem:[#allocation4 + $0x1e8] sm:$0xff] %v1462_v15  ;;  %v1321_v33 = vadd.f32 %v2810_v63, %v1320_v8  ;;  %v1369_v9 = vadd.f32 %v2810_v63, %v1368_v32 }
 0x2ce   : > { %1484 = vst [vmem:[#allocation4 + $0x70] sm:$0xff] %v1321_v33 }
 0x2cf   : > { %1500 = vst [vmem:[#allocation4 + $0xf0] sm:$0xff] %v1369_v9 }
 0x2d0   : > { %v1416_v2 = vpop.f32.mrf.mxu2  ;;  %v1464_v30 = vpop.f32.mrf.mxu3 }
 0x2d1   : > { %v1417_v31 = vadd.f32 %v2810_v63, %v1416_v2  ;;  %v1465_v6 = vadd.f32 %v2810_v63, %v1464_v30 }
 0x2d3   : > { %1516 = vst [vmem:[#allocation4 + $0x170] sm:$0xff] %v1417_v31  ;;  %v1323_v52 = vpop.f32.mrf.mxu0  ;;  %v1371_v62 = vpop.f32.mrf.mxu1 }
 0x2d4   : > { %1532 = vst [vmem:[#allocation4 + $0x1f0] sm:$0xff] %v1465_v6  ;;  %v1324_v7 = vadd.f32 %v2810_v63, %v1323_v52  ;;  %v1372_v50 = vadd.f32 %v2810_v63, %v1371_v62 }
 0x2d6   : > { %1485 = vst [vmem:[#allocation4 + $0x78] sm:$0xff] %v1324_v7 }
 0x2d7   : > { %1501 = vst [vmem:[#allocation4 + $0xf8] sm:$0xff] %v1372_v50 }
 0x2d8   : > { %v1419_v20 = vpop.f32.mrf.mxu2  ;;  %v1467_v21 = vpop.f32.mrf.mxu3 }
 0x2d9   : > { %v1420_v36 = vadd.f32 %v2810_v63, %v1419_v20  ;;  %v1468_v37 = vadd.f32 %v2810_v63, %v1467_v21 }
 0x2db   : > { %1517 = vst [vmem:[#allocation4 + $0x178] sm:$0xff] %v1420_v36 }
 0x2dc   : > { %1533 = vst [vmem:[#allocation4 + $0x1f8] sm:$0xff] %v1468_v37 }
 0x2dd PF: > { %p1745_p7 = scmp.eq.s32.totalorder %s1601_s24, 1  ;;  %s1544_s7 = sshll.u32 %s2896_s6, 4  ;;  %s1545_s7 = int_to_ptr.hbm [resolvable:$true] %s1544_s7 }
 0x2de   : > { %s1835_s8 = smov [#allocation4]   ;;  %s1836_s10 = smov 128  }
 0x2df   : > { %s1542_s9 = sshll.u32 %s1835_s8, 4  ;;  %s1837_s11 = smov 8   ;;  %s1543_s9 = int_to_ptr.vmem [resolvable:$true] %s1542_s9 }
 0x2e0   : > { %1742 = dma.vmem_to_hbm [thread:$0]  (%p1745_p7), %s1543_s9, 8192, %s1545_s7, [#allocation5], %s1836_s10, %s1836_s10, %s1837_s11  }
 0x2e1   : > { %1819 = dma.done.wait (%p1745_p7), [#allocation5], 8192  }
 0x2e2   : > { %1821 = vsyncadd (%p1745_p7), [#allocation5], 4294959104 }
 0x2e3 PF: > { %s17_s23 = sadd.s32 1, %s1832_s23   ;;  %s2976_s21 = smov %s1828_s22 }
 0x2e4   : > { %p14_p8 = scmp.ge.s32.totalorder %s17_s23, 4   ;;  %s2977_s22 = smov %s2979_s25 }
 0x2e6   :  { %16 = sbr.rel (!%p14_p8) target bundleno = 2 (0x2), region = 84 }
 0x2eb   :  { %1561 = vsyncpa [#allocation5], 1 }
 0x2ec   :  { %1563 = vsyncpa [#allocation5 + $0x1], 1 }

</bundles_post_ra>
